<compile_context>
chip_gen: v5e
topology: v5e:2x2
jax: 0.10.0
libtpu: 0.0.40
codegen_flags: <defaults>
</compile_context>

<pallas_src>
import functools

import jax
import jax.numpy as jnp
from jax.experimental import pallas as pl
from jax.experimental.pallas import tpu as pltpu


def _residual_block_kernel(
    x_ref,                                   # (T, C): full batch row (batch dim squeezed)
    w1_ref, b1_ref, g1_ref, be1_ref,
    w2_ref, b2_ref, g2_ref, be2_ref,
    out_ref,                                 # (1, tT, C) output tile
    *, K, d1, d2, T, tT, nt, pad_left, pad_right, pad2_left,
):
    eps = 1e-8                               # Layer_norm.epsilon in the PyTorch module (not 1e-5)
    C = out_ref.shape[-1]
    pad2 = (K - 1) * d2
    Th = tT + pad2                           # h rows needed to produce this output tile
    Wt = tT + pad_left + pad_right           # x rows (incl. SAME halo) needed by conv1
    dt = x_ref.dtype

    t = pl.program_id(1)

    # ---- zero-extended x window: xw[i] == x[t0 - pad_left + i], 0 outside [0, T).
    # Built purely as a value — no scratch buffer, no whole-row VMEM->VMEM copy, reads of
    # x_ref are always in bounds.
    if nt == 1:
        t0 = 0
        parts = []
        if pad_left:
            parts.append(jnp.zeros((pad_left, C), dt))
        parts.append(x_ref[...])
        if pad_right:
            parts.append(jnp.zeros((pad_right, C), dt))
        xw = jnp.concatenate(parts, axis=0) if len(parts) > 1 else parts[0]
    else:
        t0 = t * tT
        # Clamp the window start so the read never leaves [0, T).  Only the first / last tile
        # actually clamp, and their misalignment is a STATIC shift fixed by a statically
        # shifted candidate selected per tile.
        c = jnp.clip(t0 - pad_left, 0, T - Wt)
        r = x_ref[pl.ds(c, Wt), :]
        cand_first = (jnp.concatenate(
            [jnp.zeros((pad_left, C), dt), r[:Wt - pad_left, :]], axis=0)
            if pad_left else r)
        cand_last = (jnp.concatenate(
            [r[pad_right:, :], jnp.zeros((pad_right, C), dt)], axis=0)
            if pad_right else r)
        tcol = jnp.full((Wt, 1), t, jnp.int32)
        xw = jnp.where(tcol == 0, cand_first,
                       jnp.where(tcol == nt - 1, cand_last, r))

    # ---- conv1: K shifted slices fused into ONE MXU contraction (Th, K*C) @ (K*C, C).
    x_stack = jnp.concatenate([xw[k * d1:k * d1 + Th, :] for k in range(K)], axis=1)
    acc1 = jnp.dot(x_stack, w1_ref[...], preferred_element_type=jnp.float32) + b1_ref[...]

    # ---- LayerNorm over channels (biased var, eps=1e-8) + ReLU; rsqrt goes to the EUP slot.
    mean1 = jnp.mean(acc1, axis=-1, keepdims=True)
    c1 = acc1 - mean1
    var1 = jnp.mean(c1 * c1, axis=-1, keepdims=True)
    h = jnp.maximum(g1_ref[...] * (c1 * jax.lax.rsqrt(var1 + eps)) + be1_ref[...], 0.0)

    # Zero h rows that fall outside the sequence: this IS conv2's SAME zero padding.
    row = t0 - pad2_left + jax.lax.broadcasted_iota(jnp.int32, (Th, 1), 0)
    h = jnp.where((row >= 0) & (row < T), h, 0.0).astype(dt)

    # ---- conv2 (dilation 2*d1): fused contraction from static slices of h.
    h_stack = jnp.concatenate([h[k * d2:k * d2 + tT, :] for k in range(K)], axis=1)
    acc2 = jnp.dot(h_stack, w2_ref[...], preferred_element_type=jnp.float32) + b2_ref[...]

    mean2 = jnp.mean(acc2, axis=-1, keepdims=True)
    c2 = acc2 - mean2
    var2 = jnp.mean(c2 * c2, axis=-1, keepdims=True)
    o = jnp.maximum(g2_ref[...] * (c2 * jax.lax.rsqrt(var2 + eps)) + be2_ref[...], 0.0)

    # ---- residual add from the already-built window: xw[pad_left : pad_left+tT] == x[t0:t0+tT]
    res = xw[pad_left:pad_left + tT, :].astype(jnp.float32)
    out_ref[0] = (o + res).astype(out_ref.dtype)


def residual_block(x, params, *, kernel_size=3, dilation=1, block_t=None):
    """x: (B, T, C); returns (B, T, C). in_channel == out_channel (required by `out + x`)."""
    B, T, C = x.shape
    K = kernel_size
    d1 = dilation
    d2 = 2 * dilation

    # SAME padding (SamePad2d semantics): total = (K-1)*d, left = floor(total/2).
    pad1 = (K - 1) * d1
    pad2 = (K - 1) * d2
    pad1_l = pad1 // 2
    pad2_l = pad2 // 2
    pad_left = pad1_l + pad2_l                      # combined left halo of both convs
    pad_right = (pad1 + pad2) - pad_left

    # Large time tiles: per-grid-step overhead (~0.35us) and the +pad2 sublane slop are
    # amortized; whole row when T is moderate, else the largest big divisor of T.
    if block_t is None:
        if T <= 1024:
            block_t = T
        else:
            block_t = T
            for cand in (1024, 512, 256, 128, 64, 32, 16, 8):
                if T % cand == 0:
                    block_t = cand
                    break
    if T % block_t != 0 or (block_t != T and block_t % 8 != 0):
        block_t = T  # TODO(synk): mask a ragged tail tile instead of whole-row fallback.
    if block_t != T and (block_t + pad1 + pad2 > T or block_t < max(pad_left, pad_right)):
        block_t = T  # window math needs tT >= halo and tT + halo <= T
    nt = T // block_t

    w1, b1, g1, be1, w2, b2, g2, be2 = params
    # (K, Cin, Cout) -> (K*Cin, Cout): one fused contraction per conv.  Operands stay in
    # x.dtype: pass bf16 x (weights are cast to match) for the 2x-throughput bf16 MXU path on
    # v6e/v7x and halved HBM traffic; accumulation and LayerNorm stay f32 either way.
    w1f = w1.reshape(K * C, C).astype(x.dtype)
    w2f = w2.reshape(K * C, C).astype(x.dtype)
    b1 = b1.reshape(1, C).astype(jnp.float32)
    b2 = b2.reshape(1, C).astype(jnp.float32)
    g1 = g1.reshape(1, C).astype(jnp.float32)
    g2 = g2.reshape(1, C).astype(jnp.float32)
    be1 = be1.reshape(1, C).astype(jnp.float32)
    be2 = be2.reshape(1, C).astype(jnp.float32)

    kernel = functools.partial(
        _residual_block_kernel,
        K=K, d1=d1, d2=d2, T=T, tT=block_t, nt=nt,
        pad_left=pad_left, pad_right=pad_right, pad2_left=pad2_l)

    # NOTE: weight / LN-vector specs are constant across the grid; pipeline_mode=pl.Buffered(1)
    # would halve their footprint if VMEM headroom is ever tight.
    vec_spec = lambda: pl.BlockSpec((1, C), lambda b, t: (0, 0))
    w_spec = lambda: pl.BlockSpec((K * C, C), lambda b, t: (0, 0))

    grid_spec = pltpu.PrefetchScalarGridSpec(
        num_scalar_prefetch=0,
        grid=(B, nt),
        in_specs=[
            # x: one HBM read per batch row, resident across its time tiles (batch dim squeezed).
            # TODO(synk): for very large T*C (v7x: 64 MiB VMEM) switch to time-tiled x with a
            # manual halo DMA instead of whole-row residency.
            pl.BlockSpec((None, T, C), lambda b, t: (b, 0, 0)),
            w_spec(), vec_spec(), vec_spec(), vec_spec(),     # w1f, b1, gamma1, beta1
            w_spec(), vec_spec(), vec_spec(), vec_spec(),     # w2f, b2, gamma2, beta2
        ],
        out_specs=pl.BlockSpec((1, block_t, C), lambda b, t: (b, t, 0)),
    )

    isz = jnp.dtype(x.dtype).itemsize
    vmem_est = (2 * T * C * isz                           # x row (double buffered)
                + 2 * block_t * C * isz                   # out tile (double buffered)
                + 2 * (2 * K * C * C * isz + 6 * C * 4)   # weights + LN vectors
                + 16 * (block_t + pad2) * C * 4)          # in-kernel f32 intermediates
    vmem_limit = int(min(max(2 * vmem_est, 32 * 1024 * 1024), 100 * 1024 * 1024))

    cost = pl.CostEstimate(
        flops=int(4 * B * T * K * C * C + 20 * B * T * C),
        transcendentals=int(2 * B * T),
        bytes_accessed=int(2 * B * T * C * isz + 2 * K * C * C * isz))

    return pl.pallas_call(
        kernel,
        out_shape=jax.ShapeDtypeStruct((B, T, C), x.dtype),
        grid_spec=grid_spec,
        compiler_params=pltpu.CompilerParams(
            # no cross-iteration state -> both axes can be megacore-sharded
            dimension_semantics=("parallel", "parallel"),
            vmem_limit_bytes=vmem_limit),
        cost_estimate=cost,
    )(x, w1f, b1, g1, be1, w2f, b2, g2, be2)


# ---------------- parameter helpers ------------------------------------------------------
def torch_conv_weight_to_kio(w_torch):
    """PyTorch Conv2d weight (Cout, Cin, 1, K) -> (K, Cin, Cout) layout used here."""
    return jnp.transpose(w_torch[:, :, 0, :], (2, 1, 0))


def init_params(key, channels, kernel_size):
    # PyTorch conv weight is (Cout, Cin, 1, K) with truncated_normal(0, 0.02); bias zero.
    # We build the (K, Cin, Cout) layout directly (see torch_conv_weight_to_kio for imports).
    k1, k2 = jax.random.split(key)
    w1 = 0.02 * jax.random.truncated_normal(
        k1, -2.0, 2.0, (kernel_size, channels, channels), jnp.float32)
    w2 = 0.02 * jax.random.truncated_normal(
        k2, -2.0, 2.0, (kernel_size, channels, channels), jnp.float32)
    b1 = jnp.zeros((channels,), jnp.float32)
    b2 = jnp.zeros((channels,), jnp.float32)
    g1 = jnp.ones((channels,), jnp.float32)    # Layer_norm gamma
    be1 = jnp.zeros((channels,), jnp.float32)  # Layer_norm beta
    g2 = jnp.ones((channels,), jnp.float32)
    be2 = jnp.zeros((channels,), jnp.float32)
    return (w1, b1, g1, be1, w2, b2, g2, be2)


# ---------------- pure-JAX reference (correctness check only) ----------------------------
def _ref_conv(x, w, b, K, d):
    T = x.shape[1]
    pad = (K - 1) * d
    left = pad // 2
    xp = jnp.pad(x, ((0, 0), (left, pad - left), (0, 0)))
    out = jnp.zeros((x.shape[0], T, w.shape[2]), jnp.float32) + b[None, None, :]
    for k in range(K):
        out = out + jnp.einsum('btc,cd->btd', xp[:, k * d:k * d + T, :], w[k])
    return out


def _ref_ln(x, g, b):
    m = jnp.mean(x, axis=2, keepdims=True)
    v = jnp.mean((x - m) ** 2, axis=2, keepdims=True)
    return g * (x - m) / jnp.sqrt(v + 1e-8) + b


def residual_block_ref(x, params, K, d):
    w1, b1, g1, be1, w2, b2, g2, be2 = params
    h = jax.nn.relu(_ref_ln(_ref_conv(x, w1, b1, K, d), g1, be1))
    o = jax.nn.relu(_ref_ln(_ref_conv(h, w2, b2, K, 2 * d), g2, be2))
    return o + x


if __name__ == "__main__":
    key = jax.random.PRNGKey(0)
    kx1, kx2, kp = jax.random.split(key, 3)

    def check(B, T, C, K, dilation, block_t, kx):
        x = jax.random.normal(kx, (B, T, C), jnp.float32)
        params = init_params(kp, C, K)
        out = jax.block_until_ready(
            residual_block(x, params, kernel_size=K, dilation=dilation, block_t=block_t))
        ref = residual_block_ref(x, params, K, dilation)
        assert out.shape == (B, T, C)
        assert jnp.allclose(out, ref, atol=5e-4, rtol=5e-4), \
            f"mismatch vs reference (B={B}, T={T}, dil={dilation}, block_t={block_t})"

    # default (large) tile -> whole-row single-tile path
    check(2, 64, 128, 3, 1, None, kx1)
    # multi-tile path: first/last boundary tiles (nt == 2)
    check(2, 64, 128, 3, 1, 32, kx1)
    # multi-tile path with an interior tile and dilation=2 (nt == 3)
    check(2, 96, 128, 3, 2, 32, kx2)

    print("KERNEL_OK")
</pallas_src>

<mosaic_0001>
module attributes {stable_mosaic.version = 11 : i64} {
  func.func @_residual_block_kernel(%arg0: i32, %arg1: i32, %arg2: memref<1x64x128xf32, #tpu.memory_space<vmem>>, %arg3: memref<384x128xf32, #tpu.memory_space<vmem>>, %arg4: memref<1x128xf32, #tpu.memory_space<vmem>>, %arg5: memref<1x128xf32, #tpu.memory_space<vmem>>, %arg6: memref<1x128xf32, #tpu.memory_space<vmem>>, %arg7: memref<384x128xf32, #tpu.memory_space<vmem>>, %arg8: memref<1x128xf32, #tpu.memory_space<vmem>>, %arg9: memref<1x128xf32, #tpu.memory_space<vmem>>, %arg10: memref<1x128xf32, #tpu.memory_space<vmem>>, %arg11: memref<1x64x128xf32, #tpu.memory_space<vmem>>) attributes {dimension_semantics = [#tpu.dimension_semantics<parallel>, #tpu.dimension_semantics<parallel>], iteration_bounds = array<i64: 2, 1>, scalar_prefetch = 0 : i64, scratch_operands = 0 : i64, tpu.core_type = #tpu.core_type<tc>, window_params = [{transform_indices = @transform_0, window_bounds = array<i64: 1, 64, 128>}, {pipeline_mode = #tpu.pipeline_mode<synchronous>, transform_indices = @transform_1, window_bounds = array<i64: 384, 128>}, {pipeline_mode = #tpu.pipeline_mode<synchronous>, transform_indices = @transform_2, window_bounds = array<i64: 1, 128>}, {pipeline_mode = #tpu.pipeline_mode<synchronous>, transform_indices = @transform_3, window_bounds = array<i64: 1, 128>}, {pipeline_mode = #tpu.pipeline_mode<synchronous>, transform_indices = @transform_4, window_bounds = array<i64: 1, 128>}, {pipeline_mode = #tpu.pipeline_mode<synchronous>, transform_indices = @transform_5, window_bounds = array<i64: 384, 128>}, {pipeline_mode = #tpu.pipeline_mode<synchronous>, transform_indices = @transform_6, window_bounds = array<i64: 1, 128>}, {pipeline_mode = #tpu.pipeline_mode<synchronous>, transform_indices = @transform_7, window_bounds = array<i64: 1, 128>}, {pipeline_mode = #tpu.pipeline_mode<synchronous>, transform_indices = @transform_8, window_bounds = array<i64: 1, 128>}, {transform_indices = @transform_9, window_bounds = array<i64: 1, 64, 128>}]} {
    %cst = arith.constant 0.000000e+00 : f32
    %0 = vector.broadcast %cst : f32 to vector<3x128xf32>
    %c0 = arith.constant 0 : index
    %c0_0 = arith.constant 0 : index
    %c0_1 = arith.constant 0 : index
    %1 = vector.load %arg2[%c0, %c0_0, %c0_1] : memref<1x64x128xf32, #tpu.memory_space<vmem>>, vector<1x64x128xf32>
    %2 = vector.shape_cast %1 : vector<1x64x128xf32> to vector<64x128xf32>
    %cst_2 = arith.constant 0.000000e+00 : f32
    %3 = vector.broadcast %cst_2 : f32 to vector<3x128xf32>
    %4 = tpu.concatenate %0, %2, %3 in 0 : vector<3x128xf32>, vector<64x128xf32>, vector<3x128xf32> -> vector<70x128xf32>
    %5 = vector.extract_strided_slice %4 {offsets = [0, 0], sizes = [68, 128], strides = [1, 1]} : vector<70x128xf32> to vector<68x128xf32>
    %6 = vector.extract_strided_slice %4 {offsets = [1, 0], sizes = [68, 128], strides = [1, 1]} : vector<70x128xf32> to vector<68x128xf32>
    %7 = vector.extract_strided_slice %4 {offsets = [2, 0], sizes = [68, 128], strides = [1, 1]} : vector<70x128xf32> to vector<68x128xf32>
    %8 = tpu.concatenate %5, %6, %7 in 1 : vector<68x128xf32>, vector<68x128xf32>, vector<68x128xf32> -> vector<68x384xf32>
    %c0_3 = arith.constant 0 : index
    %c0_4 = arith.constant 0 : index
    %9 = vector.load %arg3[%c0_3, %c0_4] : memref<384x128xf32, #tpu.memory_space<vmem>>, vector<384x128xf32>
    %cst_5 = arith.constant dense<0.000000e+00> : vector<68x128xf32>
    %10 = tpu.matmul %8, %9, %cst_5 {dimension_numbers = #tpu.dot_dimension_numbers<[1], [0], [0], [1], [0, 0, 1, 1], [], []>} : vector<68x384xf32>, vector<384x128xf32>, vector<68x128xf32> -> vector<68x128xf32>
    %c0_6 = arith.constant 0 : index
    %c0_7 = arith.constant 0 : index
    %11 = vector.load %arg4[%c0_6, %c0_7] : memref<1x128xf32, #tpu.memory_space<vmem>>, vector<1x128xf32>
    %12 = vector.broadcast %11 : vector<1x128xf32> to vector<68x128xf32>
    %13 = arith.addf %10, %12 : vector<68x128xf32>
    %cst_8 = arith.constant dense<0.000000e+00> : vector<68xf32>
    %14 = vector.multi_reduction <add>, %13, %cst_8 [1] : vector<68x128xf32> to vector<68xf32>
    %15 = vector.shape_cast %14 : vector<68xf32> to vector<68x1xf32>
    %cst_9 = arith.constant 1.280000e+02 : f32
    %16 = vector.broadcast %cst_9 : f32 to vector<68x1xf32>
    %17 = arith.divf %15, %16 : vector<68x1xf32>
    %18 = vector.broadcast %17 : vector<68x1xf32> to vector<68x128xf32>
    %19 = arith.subf %13, %18 : vector<68x128xf32>
    %20 = arith.mulf %19, %19 : vector<68x128xf32>
    %cst_10 = arith.constant dense<0.000000e+00> : vector<68xf32>
    %21 = vector.multi_reduction <add>, %20, %cst_10 [1] : vector<68x128xf32> to vector<68xf32>
    %22 = vector.shape_cast %21 : vector<68xf32> to vector<68x1xf32>
    %cst_11 = arith.constant 1.280000e+02 : f32
    %23 = vector.broadcast %cst_11 : f32 to vector<68x1xf32>
    %24 = arith.divf %22, %23 : vector<68x1xf32>
    %c0_12 = arith.constant 0 : index
    %c0_13 = arith.constant 0 : index
    %25 = vector.load %arg5[%c0_12, %c0_13] : memref<1x128xf32, #tpu.memory_space<vmem>>, vector<1x128xf32>
    %cst_14 = arith.constant 9.99999993E-9 : f32
    %26 = vector.broadcast %cst_14 : f32 to vector<68x1xf32>
    %27 = arith.addf %24, %26 : vector<68x1xf32>
    %28 = math.rsqrt %27 : vector<68x1xf32>
    %29 = vector.broadcast %28 : vector<68x1xf32> to vector<68x128xf32>
    %30 = arith.mulf %19, %29 : vector<68x128xf32>
    %31 = vector.broadcast %25 : vector<1x128xf32> to vector<68x128xf32>
    %32 = arith.mulf %31, %30 : vector<68x128xf32>
    %c0_15 = arith.constant 0 : index
    %c0_16 = arith.constant 0 : index
    %33 = vector.load %arg6[%c0_15, %c0_16] : memref<1x128xf32, #tpu.memory_space<vmem>>, vector<1x128xf32>
    %34 = vector.broadcast %33 : vector<1x128xf32> to vector<68x128xf32>
    %35 = arith.addf %32, %34 : vector<68x128xf32>
    %cst_17 = arith.constant 0.000000e+00 : f32
    %36 = vector.broadcast %cst_17 : f32 to vector<68x128xf32>
    %37 = arith.maximumf %35, %36 : vector<68x128xf32>
    %38 = tpu.iota {dimensions = array<i32: 0>} : vector<68x1xi32>
    %c-2_i32 = arith.constant -2 : i32
    %39 = vector.broadcast %c-2_i32 : i32 to vector<68x1xi32>
    %40 = arith.addi %39, %38 : vector<68x1xi32>
    %c0_i32 = arith.constant 0 : i32
    %41 = vector.broadcast %c0_i32 : i32 to vector<68x1xi32>
    %42 = arith.cmpi sge, %40, %41 : vector<68x1xi32>
    %c64_i32 = arith.constant 64 : i32
    %43 = vector.broadcast %c64_i32 : i32 to vector<68x1xi32>
    %44 = arith.cmpi slt, %40, %43 : vector<68x1xi32>
    %45 = arith.andi %42, %44 : vector<68x1xi1>
    %cst_18 = arith.constant 0.000000e+00 : f32
    %46 = vector.shape_cast %45 : vector<68x1xi1> to vector<68x1xi1>
    %47 = vector.broadcast %46 : vector<68x1xi1> to vector<68x128xi1>
    %48 = vector.broadcast %cst_18 : f32 to vector<68x128xf32>
    %49 = arith.select %47, %37, %48 : vector<68x128xi1>, vector<68x128xf32>
    %50 = vector.extract_strided_slice %49 {offsets = [0, 0], sizes = [64, 128], strides = [1, 1]} : vector<68x128xf32> to vector<64x128xf32>
    %51 = vector.extract_strided_slice %49 {offsets = [2, 0], sizes = [64, 128], strides = [1, 1]} : vector<68x128xf32> to vector<64x128xf32>
    %52 = vector.extract_strided_slice %49 {offsets = [4, 0], sizes = [64, 128], strides = [1, 1]} : vector<68x128xf32> to vector<64x128xf32>
    %53 = tpu.concatenate %50, %51, %52 in 1 : vector<64x128xf32>, vector<64x128xf32>, vector<64x128xf32> -> vector<64x384xf32>
    %c0_19 = arith.constant 0 : index
    %c0_20 = arith.constant 0 : index
    %54 = vector.load %arg7[%c0_19, %c0_20] : memref<384x128xf32, #tpu.memory_space<vmem>>, vector<384x128xf32>
    %cst_21 = arith.constant dense<0.000000e+00> : vector<64x128xf32>
    %55 = tpu.matmul %53, %54, %cst_21 {dimension_numbers = #tpu.dot_dimension_numbers<[1], [0], [0], [1], [0, 0, 1, 1], [], []>} : vector<64x384xf32>, vector<384x128xf32>, vector<64x128xf32> -> vector<64x128xf32>
    %c0_22 = arith.constant 0 : index
    %c0_23 = arith.constant 0 : index
    %56 = vector.load %arg8[%c0_22, %c0_23] : memref<1x128xf32, #tpu.memory_space<vmem>>, vector<1x128xf32>
    %57 = vector.broadcast %56 : vector<1x128xf32> to vector<64x128xf32>
    %58 = arith.addf %55, %57 : vector<64x128xf32>
    %cst_24 = arith.constant dense<0.000000e+00> : vector<64xf32>
    %59 = vector.multi_reduction <add>, %58, %cst_24 [1] : vector<64x128xf32> to vector<64xf32>
    %60 = vector.shape_cast %59 : vector<64xf32> to vector<64x1xf32>
    %cst_25 = arith.constant 1.280000e+02 : f32
    %61 = vector.broadcast %cst_25 : f32 to vector<64x1xf32>
    %62 = arith.divf %60, %61 : vector<64x1xf32>
    %63 = vector.broadcast %62 : vector<64x1xf32> to vector<64x128xf32>
    %64 = arith.subf %58, %63 : vector<64x128xf32>
    %65 = arith.mulf %64, %64 : vector<64x128xf32>
    %cst_26 = arith.constant dense<0.000000e+00> : vector<64xf32>
    %66 = vector.multi_reduction <add>, %65, %cst_26 [1] : vector<64x128xf32> to vector<64xf32>
    %67 = vector.shape_cast %66 : vector<64xf32> to vector<64x1xf32>
    %cst_27 = arith.constant 1.280000e+02 : f32
    %68 = vector.broadcast %cst_27 : f32 to vector<64x1xf32>
    %69 = arith.divf %67, %68 : vector<64x1xf32>
    %c0_28 = arith.constant 0 : index
    %c0_29 = arith.constant 0 : index
    %70 = vector.load %arg9[%c0_28, %c0_29] : memref<1x128xf32, #tpu.memory_space<vmem>>, vector<1x128xf32>
    %cst_30 = arith.constant 9.99999993E-9 : f32
    %71 = vector.broadcast %cst_30 : f32 to vector<64x1xf32>
    %72 = arith.addf %69, %71 : vector<64x1xf32>
    %73 = math.rsqrt %72 : vector<64x1xf32>
    %74 = vector.broadcast %73 : vector<64x1xf32> to vector<64x128xf32>
    %75 = arith.mulf %64, %74 : vector<64x128xf32>
    %76 = vector.broadcast %70 : vector<1x128xf32> to vector<64x128xf32>
    %77 = arith.mulf %76, %75 : vector<64x128xf32>
    %c0_31 = arith.constant 0 : index
    %c0_32 = arith.constant 0 : index
    %78 = vector.load %arg10[%c0_31, %c0_32] : memref<1x128xf32, #tpu.memory_space<vmem>>, vector<1x128xf32>
    %79 = vector.broadcast %78 : vector<1x128xf32> to vector<64x128xf32>
    %80 = arith.addf %77, %79 : vector<64x128xf32>
    %cst_33 = arith.constant 0.000000e+00 : f32
    %81 = vector.broadcast %cst_33 : f32 to vector<64x128xf32>
    %82 = arith.maximumf %80, %81 : vector<64x128xf32>
    %83 = vector.extract_strided_slice %4 {offsets = [3, 0], sizes = [64, 128], strides = [1, 1]} : vector<70x128xf32> to vector<64x128xf32>
    %84 = arith.addf %82, %83 : vector<64x128xf32>
    %c0_34 = arith.constant 0 : index
    %c0_35 = arith.constant 0 : index
    %c0_36 = arith.constant 0 : index
    %85 = vector.load %arg11[%c0_34, %c0_35, %c0_36] : memref<1x64x128xf32, #tpu.memory_space<vmem>>, vector<1x64x128xf32>
    %86 = vector.shape_cast %85 : vector<1x64x128xf32> to vector<64x128xf32>
    %87 = vector.shape_cast %84 : vector<64x128xf32> to vector<1x64x128xf32>
    tpu.vector_store %arg11[%c0_34, %c0_35, %c0_36], %87 {strides = array<i32>} : memref<1x64x128xf32, #tpu.memory_space<vmem>>, vector<1x64x128xf32>,
    return
  }
  func.func @transform_0(%arg0: i32, %arg1: i32) -> (i32, i32, i32) {
    %c0_i32 = arith.constant 0 : i32
    %c0_i32_0 = arith.constant 0 : i32
    %c0_i32_1 = arith.constant 0 : i32
    return %arg0, %c0_i32, %c0_i32_0 : i32, i32, i32
  }
  func.func @transform_1(%arg0: i32, %arg1: i32) -> (i32, i32) {
    %c0_i32 = arith.constant 0 : i32
    %c0_i32_0 = arith.constant 0 : i32
    %c0_i32_1 = arith.constant 0 : i32
    return %c0_i32, %c0_i32_0 : i32, i32
  }
  func.func @transform_2(%arg0: i32, %arg1: i32) -> (i32, i32) {
    %c0_i32 = arith.constant 0 : i32
    %c0_i32_0 = arith.constant 0 : i32
    %c0_i32_1 = arith.constant 0 : i32
    return %c0_i32, %c0_i32_0 : i32, i32
  }
  func.func @transform_3(%arg0: i32, %arg1: i32) -> (i32, i32) {
    %c0_i32 = arith.constant 0 : i32
    %c0_i32_0 = arith.constant 0 : i32
    %c0_i32_1 = arith.constant 0 : i32
    return %c0_i32, %c0_i32_0 : i32, i32
  }
  func.func @transform_4(%arg0: i32, %arg1: i32) -> (i32, i32) {
    %c0_i32 = arith.constant 0 : i32
    %c0_i32_0 = arith.constant 0 : i32
    %c0_i32_1 = arith.constant 0 : i32
    return %c0_i32, %c0_i32_0 : i32, i32
  }
  func.func @transform_5(%arg0: i32, %arg1: i32) -> (i32, i32) {
    %c0_i32 = arith.constant 0 : i32
    %c0_i32_0 = arith.constant 0 : i32
    %c0_i32_1 = arith.constant 0 : i32
    return %c0_i32, %c0_i32_0 : i32, i32
  }
  func.func @transform_6(%arg0: i32, %arg1: i32) -> (i32, i32) {
    %c0_i32 = arith.constant 0 : i32
    %c0_i32_0 = arith.constant 0 : i32
    %c0_i32_1 = arith.constant 0 : i32
    return %c0_i32, %c0_i32_0 : i32, i32
  }
  func.func @transform_7(%arg0: i32, %arg1: i32) -> (i32, i32) {
    %c0_i32 = arith.constant 0 : i32
    %c0_i32_0 = arith.constant 0 : i32
    %c0_i32_1 = arith.constant 0 : i32
    return %c0_i32, %c0_i32_0 : i32, i32
  }
  func.func @transform_8(%arg0: i32, %arg1: i32) -> (i32, i32) {
    %c0_i32 = arith.constant 0 : i32
    %c0_i32_0 = arith.constant 0 : i32
    %c0_i32_1 = arith.constant 0 : i32
    return %c0_i32, %c0_i32_0 : i32, i32
  }
  func.func @transform_9(%arg0: i32, %arg1: i32) -> (i32, i32, i32) {
    %c0_i32 = arith.constant 0 : i32
    %c0_i32_0 = arith.constant 0 : i32
    return %arg0, %arg1, %c0_i32 : i32, i32, i32
  }
}

</mosaic_0001>

<bundles_post_ra>
// kernel: tpu_custom_call.1
= control target key start
LH: loop header
LB: loop body
LE: loop exit
PB: predicated region body
PF: predicated region fallthrough
CT: control target
= control target key end

     0   :  { %s2617_s0 = inlined_call_operand.hbm [shape: f32[2,64,128], index: 0, kind: input, shape index: {}]   ;;  %s2618_s1 = inlined_call_operand.hbm [shape: f32[384,128], index: 1, kind: input, shape index: {}]   ;;  %s2619_s2 = inlined_call_operand.vmem [shape: f32[1,128], index: 2, kind: input, shape index: {}]   ;;  %s2620_s3 = inlined_call_operand.vmem [shape: f32[1,128], index: 3, kind: input, shape index: {}]   ;;  %s2621_s4 = inlined_call_operand.vmem [shape: f32[1,128], index: 4, kind: input, shape index: {}]   ;;  %s2622_s5 = inlined_call_operand.hbm [shape: f32[384,128], index: 5, kind: input, shape index: {}]   ;;  %s2623_s6 = inlined_call_operand.vmem [shape: f32[1,128], index: 6, kind: input, shape index: {}]   ;;  %s2624_s7 = inlined_call_operand.vmem [shape: f32[1,128], index: 7, kind: input, shape index: {}]   ;;  %s2625_s8 = inlined_call_operand.vmem [shape: f32[1,128], index: 8, kind: input, shape index: {}]   ;;  %s2626_s9 = inlined_call_operand.hbm [shape: f32[2,64,128], index: 9, kind: output, shape index: {}]  }
   0x1   :  { %2634 = sst [smem:[#allocation16_spill]] %s2618_s1 }
   0x2   :  { %2635 = sst [smem:[#allocation17_spill]] %s2622_s5 }
   0x3   :  { %14 = vsyncpa [#allocation3], 0 }
   0x4   :  { %16 = vsyncpa [#allocation3 + $0x1], 0 }
   0x5   :  { %17 = vsyncpa [#allocation6], 0 }
   0x6   :  { %18 = vsyncpa [#allocation4], 0 }
   0x7   :  { %20 = vsyncpa [#allocation4 + $0x1], 0  ;;  %s1993_s30 = smov 0   ;;  %s1995_s10 = smov 0  }
   0x8   :  { %s1997_s11 = smov 0   ;;  %s1999_s12 = smov 0  }
   0x9   :  { %s2001_s13 = smov 0   ;;  %s2003_s14 = smov 0  }
   0xa LB: > { %2636 = sst [smem:[#allocation12_spill]] %s1914_s30  ;;  %s1571_s15 = sadd.s32 4294967295, %s1934_s14   ;;  %s1934_s14 = sphi %s2003_s14, %s26_s14   ;;  %s1930_s13 = sphi %s2001_s13, %s2661_s13   ;;  %s1926_s12 = sphi %s1999_s12, %s2660_s12   ;;  %s1922_s11 = sphi %s1997_s11, %s2659_s11   ;;  %s1918_s10 = sphi %s1995_s10, %s2658_s10   ;;  %s1914_s30 = sphi %s1993_s30, %s2657_s30  }
   0xb   : > { %s1572_s16 = sadd.s32 4294967294, %s1934_s14   ;;  %p58_p0 = scmp.ne.s32.totalorder %s1918_s10, %s1914_s30 }
   0xc   : > { %p2029_p1 = scmp.eq.s32.totalorder %s1571_s15, 0  ;;  %p258_p2 = scmp.eq.s32.totalorder %s1572_s16, 1 }
   0xd   : > { %p1573_p4 = scmp.ge.s32.totalorder %s1934_s14, 1  ;;  %p265_p6 = scmp.lt.s32.totalorder %s1934_s14, 3 }
   0xe   : > { %p2035_p3 = por %p2029_p1, %p58_p0  ;;  %p2040_p5 = por %p258_p2, %p58_p0 }
   0xf   : > { %s2641_s1 = sld [smem:[#allocation16_spill]]  ;;  %p2048_p7 = pnand %p1573_p4, %p265_p6 }
  0x10   : > { %s2639_s19 = scalar_select %p2040_p5, 1, 0 }
  0x11   : > { %p1640_p8 = pneg %p2048_p7  ;;  %s1936_s24 = smov [#allocation5]  }
  0x12   : > { %2640 = sst [smem:[#allocation13_spill]] %s2639_s19  ;;  %s278_s25 = sshll.u32 %s1936_s24, 4  ;;  %s279_s25 = int_to_ptr.vmem [resolvable:$true] %s278_s25 }
  0x13   : > { %p1641_p9 = pnand %p1640_p8, %p2029_p1  ;;  %p1576_p10 = scmp.ge.s32.totalorder %s1934_s14, 2 }
  0x14   : > { %s2643_s5 = sld [smem:[#allocation17_spill]]  ;;  %s2627_s29 = smov 128  }
  0x15   : > { %s276_s22 = sshll.u32 %s2641_s1, 4  ;;  %s2628_s16 = smov 8   ;;  %s277_s22 = int_to_ptr.hbm [resolvable:$true] %s276_s22 }
  0x16   : > { %1643 = dma.hbm_to_vmem [thread:$0]  (!%p1641_p9), %s277_s22, 6144, %s279_s25, [#allocation6], %s2627_s29, %s2627_s29, %s2628_s16  }
  0x17   : > { %s1939_s20 = smov [#allocation7]   ;;  %p252_p11 = scmp.eq.s32.totalorder %s1571_s15, 1 }
  0x18   : > { %s301_s21 = sshll.u32 %s1939_s20, 4  ;;  %s38_s24 = sadd.s32 1, %s1930_s13  ;;  %s302_s21 = int_to_ptr.vmem [resolvable:$true] %s301_s21 }
  0x19   : > { %p40_p12 = scmp.ge.s32.totalorder %s38_s24, 2  ;;  %s45_s26 = sadd.s32 1, %s1922_s11 }
  0x1a   : > { %s299_s28 = sshll.u32 %s2643_s5, 4  ;;  %p52_p13 = scmp.ne.s32.totalorder %s1922_s11, %s1918_s10  ;;  %s300_s28 = int_to_ptr.hbm [resolvable:$true] %s299_s28 }
  0x1b   : > { %1646 = dma.hbm_to_vmem [thread:$0]  (!%p1641_p9), %s300_s28, 6144, %s302_s21, [#allocation6], %s2627_s29, %s2627_s29, %s2628_s16  }
  0x1c   : > { %p53_p0 = scmp.eq.s32.totalorder %s1934_s14, 0  ;;  %s2663_s24 = smov (%p40_p12, %s38_s24), 0 }
  0x1d   : > { %2644 = sst [smem:[#allocation14_spill]] %s2663_s24  ;;  %p2075_p2 = por %p252_p11, %p52_p13 }
  0x1e   : > { %p1657_p4 = scmp.lt.s32.totalorder %s1934_s14, 2  ;;  %s42_s25 = ssub.s32 %s1930_s13, %s2663_s24 }
  0x1f   : > { %s2645_s22 = scalar_select %p2075_p2, 1, 0 }
  0x20   : > { %s324_s27 = sand.u32 1, %s1922_s11   ;;  %p43_p6 = scmp.eq.s32.totalorder %s42_s25, 0 }
  0x21   : > { %2646 = sst [smem:[#allocation15_spill]] %s2645_s22  ;;  %p54_p8 = por %p53_p0, %p52_p13 }
  0x22   : > { %s1577_s28 = sshll.u32 %s324_s27, 6  ;;  %s1594_s15 = sshll.u32 %s1930_s13, 6 }
  0x23   : > { %s2085_s20 = scalar_select %p43_p6, %s1922_s11, %s45_s26  }
  0x24   : > { %s333_s16 = scalar_lea.hbm %s2617_s0, %s1594_s15  ;;  %s328_s5 = scalar_lea.vmem [#allocation2], %s1577_s28 }
  0x25   : > { %s334_s1 = sshll.u32 %s333_s16, 4  ;;  %s336_s19 = sshll.u32 %s328_s5, 4  ;;  %s335_s1 = int_to_ptr.hbm [resolvable:$true] %s334_s1  ;;  %s337_s19 = int_to_ptr.vmem [resolvable:$true] %s336_s19 }
  0x26   : > { %p1648_p9 = pnand %p1657_p4, %p54_p8  ;;  %s325_s30 = scalar_lea.sflag [#allocation3], %s324_s27 }
  0x27   : > { %s2647_s24 = smov 8   ;;  %s2648_s22 = smov 128  }
  0x28   : > { %1650 = dma.hbm_to_vmem [thread:$0]  (!%p1648_p9), %s335_s1, 1024, %s337_s19, %s325_s30, %s2648_s22, %s2648_s22, %s2647_s24  }
  0x29   : > { %348 = sbr.rel (%p2048_p7) target bundleno = 1114 (0x45a), region = 56  ;;  %s2098_s26 = sand.u32 (!%p2048_p7), 1, %s1918_s10  }
  0x2a   : > { %s1581_s5 = sshll.u32 (!%p2048_p7), %s2098_s26, 6  ;;  %s351_s29 = scalar_lea.sflag (!%p2048_p7), [#allocation3], %s2098_s26 }
  0x2b   : > { %s2104_s16 = scalar_lea.vmem (!%p2048_p7), [#allocation2], %s1581_s5 }
  0x2e   : > { %1901 = dma.done.wait (%p2035_p3), %s351_s29, 1024  }
  0x2f   : > { %1903 = vsyncadd (%p2035_p3), %s351_s29, 4294966272 }
  0x30   : > { %1905 = dma.done.wait (%p2029_p1), [#allocation6], 12288  }
  0x31   : > { %1907 = vsyncadd (%p2029_p1), [#allocation6], 4294955008  ;;  %v515_v0 = vld [vmem:[#allocation5 + $0x78] sm:$0xff]  ;;  %v514_v1 = vld [vmem:[#allocation5 + $0x70] sm:$0xff]  ;;  %vm417_vm0 = vcmask 1042432   ;;  %vm1408_vm1 = vcmask 1044480  }
  0x32   : > { %1596 = vmatpush.msra.mxu1 %v515_v0  ;;  %552 = vmatpush.msra.mxu0 %v515_v0  ;;  %v513_v2 = vld [vmem:[#allocation5 + $0x68] sm:$0xff]  ;;  %v512_v3 = vld [vmem:[#allocation5 + $0x60] sm:$0xff]  ;;  %v547_v4 = vld [vmem:[#allocation5 + $0x178] sm:$0xff]  ;;  %vm473_vm3 = vcmask 1045504   ;;  %vm446_vm4 = vcmask 1046528   ;;  %vm700_vm6 = vcmask 1043456  }
  0x33   : > { %v546_v5 = vld [vmem:[#allocation5 + $0x170] sm:$0xff]  ;;  %v511_v6 = vld [vmem:[#allocation5 + $0x58] sm:$0xff]  ;;  %640 = vmatpush.msra.mxu2 %v547_v4  ;;  %v2115_v7 = vld [vmem:[%s2104_s16 + $0x20] sm:$0xff]  ;;  %s2533_s21 = scalar_lea.vmem [#allocation8], %s1581_s5  ;;  %s1595_s5 = sshll.u32 %s1926_s12, 6 }
  0x34   : > { %1597 = vmatpush.msra.mxu1 %v514_v1  ;;  %553 = vmatpush.msra.mxu0 %v514_v1  ;;  %v406_v8 = vld [vmem:[%s2104_s16 + $0x28] sm:$0xff]  ;;  %v510_v10 = vld [vmem:[#allocation5 + $0x50] sm:$0xff]  ;;  %v425_v11 = vrot.slane %v2115_v7, 5  ;;  %v544_v13 = vld [vmem:[#allocation5 + $0x160] sm:$0xff]  ;;  %s1464_s1 = scalar_lea.hbm %s2626_s9, %s1595_s5  ;;  %s1465_s17 = sshll.u32 %s2533_s21, 4  ;;  %s1466_s17 = int_to_ptr.vmem [resolvable:$true] %s1465_s17 }
  0x35   : > { %v545_v9 = vld [vmem:[#allocation5 + $0x168] sm:$0xff]  ;;  %641 = vmatpush.msra.mxu2 %v546_v5  ;;  %v427_v12 = vrot.slane %v406_v8, 5  ;;  %v2120_v14 = vld [vmem:[%s2104_s16 + $0x30] sm:$0xff]  ;;  %v543_v17 = vld [vmem:[#allocation5 + $0x158] sm:$0xff]  ;;  %s1467_s18 = sshll.u32 %s1464_s1, 4  ;;  %s1451_s12 = scalar_lea.sflag [#allocation4], %s2098_s26  ;;  %s1468_s18 = int_to_ptr.hbm [resolvable:$true] %s1467_s18 }
  0x36   : > { %1598 = vmatpush.msra.mxu1 %v513_v2  ;;  %554 = vmatpush.msra.mxu0 %v513_v2  ;;  %v509_v15 = vld [vmem:[#allocation5 + $0x48] sm:$0xff]  ;;  %v429_v16 = vrot.slane %v2120_v14, 5  ;;  %v508_v18 = vld [vmem:[#allocation5 + $0x40] sm:$0xff]  ;;  %v542_v22 = vld [vmem:[#allocation5 + $0x150] sm:$0xff]  ;;  %s1862_s19 = sshra.s32 %s1468_s18, 4  ;;  %s1868_s25 = scalar_lea.hbm %s2626_s9, 128  ;;  %s1863_s19 = int_to_ptr.hbm [resolvable:$true] %s1862_s19 }
  0x37   : > { %642 = vmatpush.msra.mxu2 %v545_v9  ;;  %v2126_v19 = vsel %vm417_vm0, %v425_v11, %v427_v12  ;;  %v507_v24 = vld [vmem:[#allocation5 + $0x38] sm:$0xff]  ;;  %v541_v26 = vld [vmem:[#allocation5 + $0x148] sm:$0xff]  ;;  %v506_v27 = vld [vmem:[#allocation5 + $0x30] sm:$0xff]  ;;  %s1864_s23 = scalar_lea.hbm %s1863_s19, 64  ;;  %p1869_p11 = scmp.lt.s32.totalorder %s1863_s19, %s2626_s9 }
  0x38   : > { %1599 = vmatpush.msra.mxu1 %v512_v3  ;;  %555 = vmatpush.msra.mxu0 %v512_v3  ;;  %v2131_v20 = vsel %vm417_vm0, %v427_v12, %v429_v16  ;;  %v1418_v21 = vrot.slane %v2126_v19, 3  ;;  %v540_v28 = vld [vmem:[#allocation5 + $0x140] sm:$0xff]  ;;  %v505_v29 = vld [vmem:[#allocation5 + $0x28] sm:$0xff]  ;;  %v539_v30 = vld [vmem:[#allocation5 + $0x138] sm:$0xff]  ;;  %p1865_p1 = scmp.ne.s32.totalorder %s1863_s19, %s1864_s23  ;;  %p1870_p12 = scmp.lt.s32.totalorder %s1868_s25, %s1864_s23 }
  0x39   : > { %643 = vmatpush.msra.mxu2 %v544_v13  ;;  %v1420_v23 = vrot.slane %v2131_v20, 3  ;;  %v504_v31 = vld [vmem:[#allocation5 + $0x20] sm:$0xff]  ;;  %v538_v32 = vld [vmem:[#allocation5 + $0x130] sm:$0xff]  ;;  %v402_v34 = vld [vmem:[%s2104_s16 + $0x8] sm:$0xff] }
  0x3a   : > { %1600 = vmatpush.msra.mxu1 %v511_v6  ;;  %556 = vmatpush.msra.mxu0 %v511_v6  ;;  %v401_v33 = vld [vmem:[%s2104_s16] sm:$0xff]  ;;  %v503_v35 = vld [vmem:[#allocation5 + $0x18] sm:$0xff]  ;;  %v537_v36 = vld [vmem:[#allocation5 + $0x128] sm:$0xff]  ;;  %v419_v38 = vrot.slane %v402_v34, 5  ;;  %p1866_p3 = pnand %p1865_p1, %p2075_p2  ;;  %p1871_p13 = por %p1870_p12, %p1869_p11 }
  0x3b   : > { %644 = vmatpush.msra.mxu2 %v543_v17  ;;  %v2140_v25 = vsel %vm1408_vm1, %v1418_v21, %v1420_v23  ;;  %v418_v37 = vrot.slane %v401_v33, 5  ;;  %v502_v39 = vld [vmem:[#allocation5 + $0x10] sm:$0xff]  ;;  %v536_v40 = vld [vmem:[#allocation5 + $0x120] sm:$0xff]  ;;  %v501_v41 = vld [vmem:[#allocation5 + $0x8] sm:$0xff] }
  0x3c   : > { %1601 = vmatpush.msra.mxu1 %v510_v10  ;;  %557 = vmatpush.msra.mxu0 %v510_v10  ;;  %v535_v42 = vld [vmem:[#allocation5 + $0x118] sm:$0xff]  ;;  %v500_v45 = vld [vmem:[#allocation5] sm:$0xff]  ;;  %v534_v46 = vld [vmem:[#allocation5 + $0x110] sm:$0xff]  ;;  %p1867_p7 = pneg %p1866_p3 }
  0x3d   : > { %645 = vmatpush.msra.mxu2 %v542_v22  ;;  %v2145_v43 = vsel %vm417_vm0, %v418_v37, %v419_v38  ;;  %v2148_v44 = vsel %vm417_vm0, 0.0, %v418_v37  ;;  %v403_v49 = vld [vmem:[%s2104_s16 + $0x10] sm:$0xff]  ;;  %v531_v50 = vld [vmem:[#allocation5 + $0xf8] sm:$0xff]  ;;  %vm1585_vm2 = vmneg %vm417_vm0 }
  0x3e   : > { %1602 = vmatpush.msra.mxu1 %v509_v15  ;;  %558 = vmatpush.msra.mxu0 %v509_v15  ;;  %v1409_v47 = vrot.slane %v2148_v44, 3  ;;  %v1410_v48 = vrot.slane %v2145_v43, 3  ;;  %v474_v51 = vrot.slane %v2148_v44, 2  ;;  %v475_v52 = vrot.slane %v2145_v43, 2  ;;  %v533_v53 = vld [vmem:[#allocation5 + $0x108] sm:$0xff]  ;;  %v530_v56 = vld [vmem:[#allocation5 + $0xf0] sm:$0xff]  ;;  %p1872_p0 = pnand %p1871_p13, %p1867_p7 }
  0x3f   : > { %646 = vmatpush.msra.mxu2 %v541_v26  ;;  %v421_v55 = vrot.slane %v403_v49, 5  ;;  %v532_v57 = vld [vmem:[#allocation5 + $0x100] sm:$0xff]  ;;  %v529_v58 = vld [vmem:[#allocation5 + $0xe8] sm:$0xff]  ;;  %v404_v62 = vld [vmem:[%s2104_s16 + $0x18] sm:$0xff] }
  0x40   : > { %1603 = vmatpush.msra.mxu1 %v508_v18  ;;  %559 = vmatpush.msra.mxu0 %v508_v18  ;;  %v2159_v54 = vsel %vm1408_vm1, %v1409_v47, %v1410_v48  ;;  %v476_v59 = vsel %vm473_vm3, %v474_v51, %v475_v52  ;;  %v528_v61 = vld [vmem:[#allocation5 + $0xe0] sm:$0xff]  ;;  %v527_v63 = vld [vmem:[#allocation5 + $0xd8] sm:$0xff]  ;;  %v423_v2 = vrot.slane %v404_v62, 5  ;;  %v526_v3 = vld [vmem:[#allocation5 + $0xd0] sm:$0xff]  ;;  %v456_v47 = vrot.slane %v2126_v19, 1 }
  0x41   : > { %647 = vmatpush.msra.mxu2 %v540_v28  ;;  %v2164_v60 = vsel %vm417_vm0, %v419_v38, %v421_v55  ;;  %v408_v0 = vld [vmem:[%s2104_s16 + $0x38] sm:$0xff]  ;;  %v525_v5 = vld [vmem:[#allocation5 + $0xc8] sm:$0xff]  ;;  %v524_v9 = vld [vmem:[#allocation5 + $0xc0] sm:$0xff]  ;;  %v448_v28 = vrot.slane %v2145_v43, 1  ;;  %v458_v51 = vrot.slane %v2131_v20, 1 }
  0x42   : > { %1604 = vmatpush.msra.mxu1 %v507_v24  ;;  %560 = vmatpush.msra.mxu0 %v507_v24  ;;  %v477_v1 = vrot.slane %v2164_v60, 2  ;;  %v431_v4 = vrot.slane %v408_v0, 5  ;;  %v2173_v8 = vsel %vm417_vm0, %v421_v55, %v423_v2  ;;  %v523_v12 = vld [vmem:[#allocation5 + $0xb8] sm:$0xff]  ;;  %v522_v15 = vld [vmem:[#allocation5 + $0xb0] sm:$0xff]  ;;  %v2185_v17 = vsel %vm417_vm0, %v423_v2, %v425_v11  ;;  %v520_v7 = vld [vmem:[#allocation5 + $0xa0] sm:$0xff] }
  0x43   : > { %648 = vmatpush.msra.mxu2 %v539_v30  ;;  %v479_v13 = vrot.slane %v2173_v8, 2  ;;  %v1416_v14 = vrot.slane %v2185_v17, 3  ;;  %v519_v11 = vld [vmem:[#allocation5 + $0x98] sm:$0xff]  ;;  %v481_v24 = vrot.slane %v2185_v17, 2  ;;  %v518_v26 = vld [vmem:[#allocation5 + $0x90] sm:$0xff]  ;;  %v516_v30 = vld [vmem:[#allocation5 + $0x80] sm:$0xff] }
  0x44   : > { %1605 = vmatpush.msra.mxu1 %v506_v27  ;;  %561 = vmatpush.msra.mxu0 %v506_v27  ;;  %v478_v6 = vsel %vm473_vm3, %v475_v52, %v477_v1  ;;  %v2178_v10 = vsel %vm417_vm0, %v429_v16, %v431_v4  ;;  %v521_v16 = vld [vmem:[#allocation5 + $0xa8] sm:$0xff]  ;;  %v447_v27 = vrot.slane %v2148_v44, 1  ;;  %v450_v33 = vrot.slane %v2164_v60, 1 }
  0x45   : > { %649 = vmatpush.msra.mxu2 %v538_v32  ;;  %v480_v18 = vsel %vm473_vm3, %v477_v1, %v479_v13  ;;  %v2195_v22 = vsel %vm1408_vm1, %v1416_v14, %v1418_v21  ;;  %v482_v21 = vsel %vm473_vm3, %v479_v13, %v481_v24  ;;  %v483_v32 = vrot.slane %v2126_v19, 2 }
  0x46   : > { %1606 = vmatpush.msra.mxu1 %v505_v29  ;;  %562 = vmatpush.msra.mxu0 %v505_v29  ;;  %v517_v29 = vld [vmem:[#allocation5 + $0x88] sm:$0xff]  ;;  %v2217_v44 = vsel %vm417_vm0, %v431_v4, 0.0  ;;  %v459_v52 = vsel %vm446_vm4, %v456_v47, %v458_v51 }
  0x47   : > { %650 = vmatpush.msra.mxu2 %v537_v36  ;;  %v484_v34 = vsel %vm473_vm3, %v481_v24, %v483_v32  ;;  %v485_v36 = vrot.slane %v2131_v20, 2 }
  0x48   : > { %1607 = vmatpush.msra.mxu1 %v504_v31  ;;  %563 = vmatpush.msra.mxu0 %v504_v31  ;;  %v449_v31 = vsel %vm446_vm4, %v447_v27, %v448_v28 }
  0x49   : > { %651 = vmatpush.msra.mxu2 %v536_v40  ;;  %v486_v38 = vsel %vm473_vm3, %v483_v32, %v485_v36  ;;  %v487_v40 = vrot.slane %v2178_v10, 2 }
  0x4a   : > { %1608 = vmatpush.msra.mxu1 %v503_v35  ;;  %564 = vmatpush.msra.mxu0 %v503_v35  ;;  %v451_v35 = vsel %vm446_vm4, %v448_v28, %v450_v33 }
  0x4b   : > { %652 = vmatpush.msra.mxu2 %v535_v42  ;;  %v488_v42 = vsel %vm473_vm3, %v485_v36, %v487_v40 }
  0x4c   : > { %1609 = vmatpush.msra.mxu1 %v502_v39  ;;  %565 = vmatpush.msra.mxu0 %v502_v39 }
  0x4d   : > { %653 = vmatpush.msra.mxu2 %v534_v46  ;;  %v489_v46 = vrot.slane %v2217_v44, 2 }
  0x4e   : > { %1610 = vmatpush.msra.mxu1 %v501_v41  ;;  %566 = vmatpush.msra.mxu0 %v501_v41  ;;  %v454_v41 = vrot.slane %v2185_v17, 1 }
  0x4f   : > { %654 = vmatpush.msra.mxu2 %v533_v53  ;;  %v490_v49 = vsel %vm473_vm3, %v487_v40, %v489_v46  ;;  %v460_v53 = vrot.slane %v2178_v10, 1 }
  0x50   : > { %1611 = vmatpush.msra.mxu1 %v500_v45  ;;  %567 = vmatpush.msra.mxu0 %v500_v45 }
  0x51   : > { %583 = vmatmul.f32.vlgmr.msra.gmra.mxu1 %v2126_v19  ;;  %1586 = vmatmul.msk.f32.vlgmr.msra.gmra.mxu0 %vm1585_vm2, %v418_v37  ;;  %v452_v37 = vrot.slane %v2173_v8, 1  ;;  %v461_v55 = vsel %vm446_vm4, %v458_v51, %v460_v53 }
  0x52   : > { %596 = vmatpush.msrb.mxu1 %v531_v50  ;;  %655 = vmatpush.msra.mxu2 %v532_v57  ;;  %v457_v50 = vsel %vm446_vm4, %v454_v41, %v456_v47 }
  0x53   : > { %656 = vmatmul.f32.vlgmr.msra.gmra.mxu2 %v476_v59  ;;  %v453_v39 = vsel %vm446_vm4, %v450_v33, %v452_v37  ;;  %v455_v45 = vsel %vm446_vm4, %v452_v37, %v454_v41 }
  0x54   : > { %597 = vmatpush.msrb.mxu1 %v530_v56  ;;  %v462_v56 = vrot.slane %v2217_v44, 1 }
  0x56   : > { %598 = vmatpush.msrb.mxu1 %v529_v58  ;;  %v463_v19 = vsel %vm446_vm4, %v460_v53, %v462_v56 }
  0x58   : > { %599 = vmatpush.msrb.mxu1 %v528_v61 }
  0x59   : > { %586 = vmatmul.f32.gmra.mxu1 %v2131_v20  ;;  %571 = vmatmul.f32.gmra.mxu0 %v2145_v43 }
  0x5a   : > { %600 = vmatpush.msrb.mxu1 %v527_v63  ;;  %v1716_v63 = vld [vmem:[%s2619_s2] ss:$0 sm:$0xff] }
  0x5b   : > { %659 = vmatmul.f32.gmra.mxu2 %v478_v6 }
  0x5c   : > { %601 = vmatpush.msrb.mxu1 %v526_v3 }
  0x5e   : > { %602 = vmatpush.msrb.mxu1 %v525_v5 }
  0x60   : > { %603 = vmatpush.msrb.mxu1 %v524_v9 }
  0x61   : > { %589 = vmatmul.f32.gmra.mxu1 %v2178_v10  ;;  %574 = vmatmul.f32.gmra.mxu0 %v2164_v60 }
  0x62   : > { %604 = vmatpush.msrb.mxu1 %v523_v12 }
  0x63   : > { %662 = vmatmul.f32.gmra.mxu2 %v480_v18 }
  0x64   : > { %605 = vmatpush.msrb.mxu1 %v522_v15 }
  0x66   : > { %606 = vmatpush.msrb.mxu1 %v521_v16 }
  0x68   : > { %607 = vmatpush.msrb.mxu1 %v520_v7 }
  0x69   : > { %1587 = vmatmul.msk.f32.gmra.mxu1 %vm417_vm0, %v431_v4  ;;  %577 = vmatmul.f32.gmra.mxu0 %v2173_v8 }
  0x6a   : > { %608 = vmatpush.msrb.mxu1 %v519_v11 }
  0x6b   : > { %665 = vmatmul.f32.gmra.mxu2 %v482_v21 }
  0x6c   : > { %609 = vmatpush.msrb.mxu1 %v518_v26 }
  0x6e   : > { %610 = vmatpush.msrb.mxu1 %v517_v29 }
  0x70   : > { %611 = vmatpush.msrb.mxu1 %v516_v30 }
  0x71   : > { %612 = vmatmul.f32.vlgmr.msrb.gmra.mxu1 %v449_v31  ;;  %580 = vmatmul.f32.gmra.mxu0 %v2185_v17  ;;  %v2523_v17 = vld [vmem:[%s2625_s8] ss:$0 sm:$0xff] }
  0x73   : > { %668 = vmatmul.f32.gmra.mxu2 %v484_v34 }
  0x79   : > { %615 = vmatmul.f32.gmra.mxu1 %v451_v35 }
  0x7b   : > { %671 = vmatmul.f32.gmra.mxu2 %v486_v38 }
  0x81   : > { %618 = vmatmul.f32.gmra.mxu1 %v453_v39 }
  0x83   : > { %674 = vmatmul.f32.gmra.mxu2 %v488_v42 }
  0x89   : > { %621 = vmatmul.f32.gmra.mxu1 %v455_v45 }
  0x8b   : > { %677 = vmatmul.f32.gmra.mxu2 %v490_v49 }
  0x91   : > { %624 = vmatmul.f32.gmra.mxu1 %v457_v50 }
  0x93   : > { %680 = vmatmul.f32.gmra.mxu2 %v489_v46 }
  0x99   : > { %627 = vmatmul.f32.gmra.mxu1 %v459_v52 }
  0xa1   : > { %630 = vmatmul.f32.gmra.mxu1 %v461_v55 }
  0xa9   : > { %633 = vmatmul.f32.gmra.mxu1 %v463_v19 }
  0xb1   : > { %636 = vmatmul.f32.gmra.mxu1 %v462_v56 }
  0xce   : > { %v584_v57 = vpop.f32.mrf.mxu1  ;;  %v569_v61 = vpop.f32.mrf.mxu0 }
  0xcf   : > { %v570_v4 = vadd.f32 %v1716_v63, %v569_v61  ;;  %v585_v34 = vadd.f32 %v1716_v63, %v584_v57  ;;  %v1940_v57 = vmov 128.0  }
  0xd0   : > { %1722 = vrcp.f32 %v1940_v57  ;;  %v1049_v57 = vld [vmem:[#allocation7 + $0x40] sm:$0xff] }
  0xd6   : > { %v587_v58 = vpop.f32.mrf.mxu1  ;;  %v657_v62 = vpop.f32.mrf.mxu2 }
  0xd7   : > { %v572_v2 = vpop.f32.mrf.mxu0  ;;  %v588_v40 = vadd.f32 %v1716_v63, %v587_v58  ;;  %v1723_v58 = vpop.eup %1722 }
  0xd8   : > { %v573_v12 = vadd.f32 %v1716_v63, %v572_v2  ;;  %v705_v61 = vmul.f32 128.0, %v1723_v58  ;;  %vm709_vm5 = vweird.f32 %v1723_v58 }
  0xde   : > { %v590_v59 = vpop.f32.mrf.mxu1  ;;  %v660_v3 = vpop.f32.mrf.mxu2 }
  0xdf   : > { %v575_v13 = vpop.f32.mrf.mxu0  ;;  %v591_v49 = vadd.f32 %v1716_v63, %v590_v59 }
  0xe0   : > { %v576_v37 = vadd.f32 %v1716_v63, %v575_v13 }
  0xe6   : > { %v593_v0 = vpop.f32.mrf.mxu1  ;;  %v663_v15 = vpop.f32.mrf.mxu2 }
  0xe7   : > { %v2233_v1 = vadd.f32 %v1716_v63, %v593_v0  ;;  %v578_v11 = vpop.f32.mrf.mxu0 }
  0xe8   : > { %v579_v53 = vadd.f32 %v1716_v63, %v578_v11 }
  0xee   : > { %v613_v5 = vpop.f32.mrf.mxu1  ;;  %v666_v26 = vpop.f32.mrf.mxu2 }
  0xef   : > { %v614_v6 = vadd.f32 %v613_v5, %v570_v4  ;;  %v581_v28 = vpop.f32.mrf.mxu0 }
  0xf0   : > { %v582_v21 = vadd.f32 %v1716_v63, %v581_v28 }
  0xf1   : > { %v2235_v9 = vadd.f32 %v657_v62, %v614_v6  ;;  %v706_v62 = vsub.f32 1.0, %v705_v61  ;;  %v1047_v61 = vld [vmem:[#allocation7 + $0x30] sm:$0xff] }
  0xf3   : > { %684 = vadd.xlane.f32.xlu2 %v2235_v9  ;;  %v707_v0 = vmul.f32 %v1723_v58, %v706_v62  ;;  %v1046_v62 = vld [vmem:[#allocation7 + $0x28] sm:$0xff] }
  0xf5   : > { %v708_v2 = vadd.f32 %v1723_v58, %v707_v0  ;;  %v1045_v0 = vld [vmem:[#allocation7 + $0x20] sm:$0xff] }
  0xf6   : > { %v616_v16 = vpop.f32.mrf.mxu1  ;;  %v669_v29 = vpop.f32.mrf.mxu2 }
  0xf7   : > { %v617_v18 = vadd.f32 %v616_v16, %v573_v12  ;;  %v1056_v12 = vld [vmem:[#allocation7 + $0x78] sm:$0xff] }
  0xf8   : > { %1612 = vmatpush.msra.mxu3 %v1056_v12  ;;  %1093 = vmatpush.msrb.mxu2 %v1056_v12  ;;  %v1041_v12 = vld [vmem:[#allocation7] sm:$0xff] }
  0xf9   : > { %v2238_v7 = vadd.f32 %v660_v3, %v617_v18  ;;  %v2241_v3 = vsel %vm709_vm5, %v1723_v58, %v708_v2  ;;  %v1048_v58 = vld [vmem:[#allocation7 + $0x38] sm:$0xff] }
  0xfa   : > { %v1044_v2 = vld [vmem:[#allocation7 + $0x18] sm:$0xff] }
  0xfb   : > { %686 = vadd.xlane.f32.xlu2 %v2238_v7 }
  0xfe   : > { %v619_v24 = vpop.f32.mrf.mxu1  ;;  %v672_v33 = vpop.f32.mrf.mxu2 }
  0xff   : > { %v620_v41 = vadd.f32 %v619_v24, %v576_v37 }
 0x101   : > { %v664_v46 = vadd.f32 %v663_v15, %v620_v41 }
 0x106   : > { %v622_v27 = vpop.f32.mrf.mxu1  ;;  %v675_v39 = vpop.f32.mrf.mxu2 }
 0x107   : > { %v623_v56 = vadd.f32 %v622_v27, %v579_v53  ;;  %v1053_v53 = vld [vmem:[#allocation7 + $0x60] sm:$0xff] }
 0x109   : > { %v667_v19 = vadd.f32 %v666_v26, %v623_v56  ;;  %v1051_v56 = vld [vmem:[#allocation7 + $0x50] sm:$0xff] }
 0x10e   : > { %v625_v30 = vpop.f32.mrf.mxu1  ;;  %v678_v51 = vpop.f32.mrf.mxu2 }
 0x10f   : > { %v626_v31 = vadd.f32 %v625_v30, %v582_v21 }
 0x111   : > { %v670_v32 = vadd.f32 %v669_v29, %v626_v31 }
 0x113   : > { %692 = vadd.xlane.f32.xlu0 %v670_v32 }
 0x116   : > { %v628_v35 = vpop.f32.mrf.mxu1 }
 0x117   : > { %v629_v36 = vadd.f32 %v628_v35, %v585_v34 }
 0x119   : > { %v673_v38 = vadd.f32 %v672_v33, %v629_v36 }
 0x11b   : > { %694 = vadd.xlane.f32.xlu0 %v673_v38 }
 0x11e   : > { %v631_v42 = vpop.f32.mrf.mxu1 }
 0x11f   : > { %v632_v45 = vadd.f32 %v631_v42, %v588_v40 }
 0x121   : > { %v676_v47 = vadd.f32 %v675_v39, %v632_v45  ;;  %v681_v45 = vpop.f32.mrf.mxu2 }
 0x123   : > { %696 = vadd.xlane.f32.xlu1 %v676_v47  ;;  %688 = vadd.xlane.f32.xlu0 %v664_v46 }
 0x126   : > { %v634_v50 = vpop.f32.mrf.mxu1 }
 0x127   : > { %v635_v52 = vadd.f32 %v634_v50, %v591_v49 }
 0x129   : > { %v679_v55 = vadd.f32 %v678_v51, %v635_v52  ;;  %v1055_v51 = vld [vmem:[#allocation7 + $0x70] sm:$0xff]  ;;  %v1054_v52 = vld [vmem:[#allocation7 + $0x68] sm:$0xff] }
 0x12a   : > { %1613 = vmatpush.msra.mxu3 %v1055_v51  ;;  %1094 = vmatpush.msrb.mxu2 %v1055_v51 }
 0x12b   : > { %698 = vadd.xlane.f32.xlu1 %v679_v55 }
 0x12c   : > { %1614 = vmatpush.msra.mxu3 %v1054_v52  ;;  %1095 = vmatpush.msrb.mxu2 %v1054_v52 }
 0x12e   : > { %v637_v37 = vpop.f32.mrf.mxu1  ;;  %1615 = vmatpush.msra.mxu3 %v1053_v53  ;;  %1096 = vmatpush.msrb.mxu2 %v1053_v53  ;;  %v1079_v53 = vld [vmem:[#allocation7 + $0x130] sm:$0xff] }
 0x12f   : > { %v638_v41 = vadd.f32 %v637_v37, %v2233_v1  ;;  %v1068_v37 = vld [vmem:[#allocation7 + $0xd8] sm:$0xff] }
 0x133   : > { %690 = vadd.xlane.f32.xlu1 %v667_v19 }
 0x166   : > { %v685_v13 = vpop.xlane.xlu2 %684 }
 0x167   : > { %v711_v18 = vmul.f32 %v2241_v3, %v685_v13 }
 0x169   : > { %v2255_v26 = vsub.f32 %v2235_v9, %v711_v18 }
 0x16e   : > { %v687_v29 = vpop.xlane.xlu2 %686 }
 0x16f   : > { %v712_v33 = vmul.f32 %v2241_v3, %v687_v29  ;;  %v1084_v29 = vld [vmem:[#allocation7 + $0x158] sm:$0xff] }
 0x171   : > { %v2270_v36 = vsub.f32 %v2238_v7, %v712_v33 }
 0x173   : > { %v730_v42 = vmul.f32 %v2270_v36, %v2270_v36 }
 0x186   : > { %v693_v59 = vpop.xlane.xlu0 %692 }
 0x187   : > { %v715_v4 = vmul.f32 %v2241_v3, %v693_v59  ;;  %v1043_v59 = vld [vmem:[#allocation7 + $0x10] sm:$0xff] }
 0x189   : > { %v2244_v5 = vsub.f32 %v670_v32, %v715_v4  ;;  %v729_v32 = vmul.f32 %v2255_v26, %v2255_v26  ;;  %v1088_v4 = vld [vmem:[#allocation7 + $0x178] sm:$0xff] }
 0x18a   : > { %1175 = vmatpush.msrb.mxu0 %v1088_v4 }
 0x18b   : > { %v733_v63 = vmul.f32 %v2244_v5, %v2244_v5 }
 0x18d   : > { %746 = vadd.xlane.f32.xlu2 %v733_v63  ;;  %v1042_v63 = vld [vmem:[#allocation7 + $0x8] sm:$0xff] }
 0x18e   : > { %v695_v6 = vpop.xlane.xlu0 %694 }
 0x18f   : > { %v716_v15 = vmul.f32 %v2241_v3, %v695_v6  ;;  %v1087_v6 = vld [vmem:[#allocation7 + $0x170] sm:$0xff] }
 0x190   : > { %1176 = vmatpush.msrb.mxu0 %v1087_v6  ;;  %v2309_v6 = vld [vmem:[%s2620_s3] ss:$0 sm:$0xff] }
 0x191   : > { %v2249_v16 = vsub.f32 %v673_v38, %v716_v15  ;;  %v1086_v15 = vld [vmem:[#allocation7 + $0x168] sm:$0xff] }
 0x192   : > { %1177 = vmatpush.msrb.mxu0 %v1086_v15 }
 0x193   : > { %v734_v11 = vmul.f32 %v2249_v16, %v2249_v16 }
 0x195   : > { %748 = vadd.xlane.f32.xlu0 %v734_v11  ;;  %v1072_v11 = vld [vmem:[#allocation7 + $0xf8] sm:$0xff] }
 0x196   : > { %v697_v24 = vpop.xlane.xlu1 %696  ;;  %v689_v28 = vpop.xlane.xlu0 %688 }
 0x197   : > { %v717_v27 = vmul.f32 %v2241_v3, %v697_v24  ;;  %v713_v30 = vmul.f32 %v2241_v3, %v689_v28  ;;  %v1085_v24 = vld [vmem:[#allocation7 + $0x160] sm:$0xff]  ;;  %v1071_v28 = vld [vmem:[#allocation7 + $0xf0] sm:$0xff] }
 0x198   : > { %1178 = vmatpush.msrb.mxu0 %v1085_v24  ;;  %v2317_v24 = vld [vmem:[%s2621_s4] ss:$0 sm:$0xff] }
 0x199   : > { %v2258_v21 = vsub.f32 %v676_v47, %v717_v27  ;;  %v2266_v34 = vsub.f32 %v664_v46, %v713_v30  ;;  %v2282_v47 = vadd.f32 %v681_v45, %v638_v41  ;;  %v1070_v30 = vld [vmem:[#allocation7 + $0xe8] sm:$0xff]  ;;  %v1067_v45 = vld [vmem:[#allocation7 + $0xd0] sm:$0xff] }
 0x19a   : > { %1179 = vmatpush.msrb.mxu0 %v1084_v29 }
 0x19b   : > { %v735_v31 = vmul.f32 %v2258_v21, %v2258_v21  ;;  %v731_v40 = vmul.f32 %v2266_v34, %v2266_v34  ;;  %v701_v1 = vsel %vm700_vm6, %v2282_v47, 0.0 }
 0x19d   : > { %750 = vadd.xlane.f32.xlu1 %v735_v31  ;;  %738 = vadd.xlane.f32.xlu0 %v729_v32  ;;  %v1083_v31 = vld [vmem:[#allocation7 + $0x150] sm:$0xff]  ;;  %v1069_v32 = vld [vmem:[#allocation7 + $0xe0] sm:$0xff] }
 0x19e   : > { %v699_v9 = vpop.xlane.xlu1 %698  ;;  %1180 = vmatpush.msrb.mxu0 %v1083_v31  ;;  %v1075_v31 = vld [vmem:[#allocation7 + $0x110] sm:$0xff] }
 0x19f   : > { %v718_v35 = vmul.f32 %v2241_v3, %v699_v9 }
 0x1a1   : > { %v2272_v38 = vsub.f32 %v679_v55, %v718_v35  ;;  %v1052_v55 = vld [vmem:[#allocation7 + $0x58] sm:$0xff]  ;;  %v1082_v35 = vld [vmem:[#allocation7 + $0x148] sm:$0xff] }
 0x1a2   : > { %1616 = vmatpush.msra.mxu3 %v1052_v55  ;;  %1097 = vmatpush.msrb.mxu2 %v1052_v55 }
 0x1a3   : > { %v736_v39 = vmul.f32 %v2272_v38, %v2272_v38  ;;  %1181 = vmatpush.msrb.mxu0 %v1082_v35 }
 0x1a4   : > { %1617 = vmatpush.msra.mxu3 %v1051_v56  ;;  %1098 = vmatpush.msrb.mxu2 %v1051_v56 }
 0x1a5   : > { %752 = vadd.xlane.f32.xlu2 %v736_v39  ;;  %742 = vadd.xlane.f32.xlu0 %v731_v40 }
 0x1a6   : > { %740 = vadd.xlane.f32.xlu1 %v730_v42  ;;  %v691_v7 = vpop.xlane.xlu1 %690  ;;  %v1081_v42 = vld [vmem:[#allocation7 + $0x140] sm:$0xff] }
 0x1a7   : > { %v714_v46 = vmul.f32 %v2241_v3, %v691_v7  ;;  %1182 = vmatpush.msrb.mxu0 %v1081_v42  ;;  %v1060_v42 = vld [vmem:[#allocation7 + $0x98] sm:$0xff] }
 0x1a9   : > { %v2284_v49 = vsub.f32 %v667_v19, %v714_v46  ;;  %v1050_v19 = vld [vmem:[#allocation7 + $0x48] sm:$0xff]  ;;  %v1080_v46 = vld [vmem:[#allocation7 + $0x138] sm:$0xff] }
 0x1aa   : > { %1618 = vmatpush.msra.mxu3 %v1050_v19  ;;  %1099 = vmatpush.msrb.mxu2 %v1050_v19  ;;  %v1065_v19 = vld [vmem:[#allocation7 + $0xc0] sm:$0xff] }
 0x1ab   : > { %v732_v50 = vmul.f32 %v2284_v49, %v2284_v49  ;;  %1183 = vmatpush.msrb.mxu0 %v1080_v46 }
 0x1ac   : > { %1619 = vmatpush.msra.mxu3 %v1049_v57  ;;  %1100 = vmatpush.msrb.mxu2 %v1049_v57 }
 0x1ad   : > { %702 = vadd.xlane.f32.xlu2 %v701_v1  ;;  %1184 = vmatpush.msrb.mxu0 %v1079_v53 }
 0x1ae   : > { %744 = vadd.xlane.f32.xlu1 %v732_v50  ;;  %1620 = vmatpush.msra.mxu3 %v1048_v58  ;;  %v1066_v50 = vld [vmem:[#allocation7 + $0xc8] sm:$0xff] }
 0x1af   : > { %1101 = vmatpush.msrb.mxu2 %v1048_v58  ;;  %v1078_v58 = vld [vmem:[#allocation7 + $0x128] sm:$0xff] }
 0x1b0   : > { %1621 = vmatpush.msra.mxu3 %v1047_v61  ;;  %1185 = vmatpush.msrb.mxu0 %v1078_v58  ;;  %v1058_v58 = vld [vmem:[#allocation7 + $0x88] sm:$0xff] }
 0x1b1   : > { %1102 = vmatpush.msrb.mxu2 %v1047_v61 }
 0x1b2   : > { %1622 = vmatpush.msra.mxu3 %v1046_v62 }
 0x1b3   : > { %1103 = vmatpush.msrb.mxu2 %v1046_v62 }
 0x1b4   : > { %1623 = vmatpush.msra.mxu3 %v1045_v0 }
 0x1b5   : > { %1104 = vmatpush.msrb.mxu2 %v1045_v0 }
 0x1b6   : > { %1624 = vmatpush.msra.mxu3 %v1044_v2 }
 0x1b7   : > { %1105 = vmatpush.msrb.mxu2 %v1044_v2  ;;  %v1064_v2 = vld [vmem:[#allocation7 + $0xb8] sm:$0xff] }
 0x1b8   : > { %1625 = vmatpush.msra.mxu3 %v1043_v59 }
 0x1b9   : > { %1106 = vmatpush.msrb.mxu2 %v1043_v59 }
 0x1ba   : > { %1626 = vmatpush.msra.mxu3 %v1042_v63 }
 0x1bb   : > { %1107 = vmatpush.msrb.mxu2 %v1042_v63  ;;  %v1077_v63 = vld [vmem:[#allocation7 + $0x120] sm:$0xff] }
 0x1bc   : > { %1627 = vmatpush.msra.mxu3 %v1041_v12  ;;  %1186 = vmatpush.msrb.mxu0 %v1077_v63  ;;  %v909_v63 = vlaneseq }
 0x1bd   : > { %1108 = vmatpush.msrb.mxu2 %v1041_v12  ;;  %v1063_v12 = vld [vmem:[#allocation7 + $0xb0] sm:$0xff] }
 0x1be   : > { %1134 = vmatpush.msrb.mxu3 %v1072_v11 }
 0x1c0   : > { %1135 = vmatpush.msrb.mxu3 %v1071_v28 }
 0x1c2   : > { %1136 = vmatpush.msrb.mxu3 %v1070_v30 }
 0x1c4   : > { %1137 = vmatpush.msrb.mxu3 %v1069_v32  ;;  %v1061_v32 = vld [vmem:[#allocation7 + $0xa0] sm:$0xff] }
 0x1c6   : > { %1138 = vmatpush.msrb.mxu3 %v1068_v37 }
 0x1c8   : > { %1139 = vmatpush.msrb.mxu3 %v1067_v45  ;;  %v1073_v45 = vld [vmem:[#allocation7 + $0x100] sm:$0xff] }
 0x1ca   : > { %1140 = vmatpush.msrb.mxu3 %v1066_v50 }
 0x1cc   : > { %1141 = vmatpush.msrb.mxu3 %v1065_v19 }
 0x1ce   : > { %1142 = vmatpush.msrb.mxu3 %v1064_v2 }
 0x1d0   : > { %1143 = vmatpush.msrb.mxu3 %v1063_v12  ;;  %v1057_v12 = vld [vmem:[#allocation7 + $0x80] sm:$0xff] }
 0x200   : > { %v747_v13 = vpop.xlane.xlu2 %746 }
 0x201   : > { %v761_v18 = vmul.f32 %v747_v13, %v2241_v3 }
 0x203   : > { %v771_v27 = vadd.f32 1e-08, %v761_v18  ;;  %v1076_v18 = vld [vmem:[#allocation7 + $0x118] sm:$0xff] }
 0x204   : > { %1187 = vmatpush.msrb.mxu0 %v1076_v18 }
 0x205   : > { %1724 = vrsqrt.f32 %v771_v27  ;;  %vm822_vm8 = vweird.f32 %v771_v27 }
 0x206   : > { %1188 = vmatpush.msrb.mxu0 %v1075_v31 }
 0x208   : > { %v749_v33 = vpop.xlane.xlu0 %748 }
 0x209   : > { %v762_v9 = vmul.f32 %v749_v33, %v2241_v3 }
 0x20b   : > { %v1725_v39 = vpop.eup %1724  ;;  %v2292_v40 = vadd.f32 1e-08, %v762_v9 }
 0x20c   : > { %v817_v41 = vmul.f32 %v1725_v39, %v771_v27  ;;  %vm823_vm7 = vweird.f32 %v1725_v39  ;;  %v1062_v27 = vld [vmem:[#allocation7 + $0xa8] sm:$0xff] }
 0x20d   : > { %1726 = vrsqrt.f32 %v2292_v40  ;;  %vm824_vm9 = vmor %vm822_vm8, %vm823_vm7  ;;  %1144 = vmatpush.msrb.mxu3 %v1062_v27  ;;  %vm832_vm11 = vweird.f32 %v2292_v40 }
 0x20e   : > { %v818_v7 = vmul.f32 %v1725_v39, %v817_v41  ;;  %v1074_v41 = vld [vmem:[#allocation7 + $0x108] sm:$0xff] }
 0x20f   : > { %1145 = vmatpush.msrb.mxu3 %v1061_v32  ;;  %1189 = vmatpush.msrb.mxu0 %v1074_v41 }
 0x210   : > { %v819_v1 = vmul.f32 0.5, %v818_v7  ;;  %v751_v51 = vpop.xlane.xlu1 %750  ;;  %v739_v52 = vpop.xlane.xlu0 %738 }
 0x211   : > { %v763_v55 = vmul.f32 %v751_v51, %v2241_v3  ;;  %v757_v56 = vmul.f32 %v739_v52, %v2241_v3  ;;  %v1059_v51 = vld [vmem:[#allocation7 + $0x90] sm:$0xff]  ;;  %1146 = vmatpush.msrb.mxu3 %v1060_v42  ;;  %1190 = vmatpush.msrb.mxu0 %v1073_v45 }
 0x212   : > { %v820_v57 = vsub.f32 1.5, %v819_v1 }
 0x213   : > { %v2297_v61 = vpop.eup %1726  ;;  %v2299_v62 = vadd.f32 1e-08, %v763_v55  ;;  %v2301_v0 = vadd.f32 1e-08, %v757_v56  ;;  %1147 = vmatpush.msrb.mxu3 %v1059_v51 }
 0x214   : > { %v821_v59 = vmul.f32 %v1725_v39, %v820_v57  ;;  %v827_v4 = vmul.f32 %v2297_v61, %v2292_v40  ;;  %vm833_vm10 = vweird.f32 %v2297_v61 }
 0x215   : > { %1728 = vrsqrt.f32 %v2299_v62  ;;  %vm2339_vm12 = vmor %vm832_vm11, %vm833_vm10  ;;  %1148 = vmatpush.msrb.mxu3 %v1058_v58  ;;  %vm842_vm14 = vweird.f32 %v2299_v62  ;;  %vm782_vm0 = vweird.f32 %v2301_v0 }
 0x216   : > { %v825_v13 = vsel %vm824_vm9, %v1725_v39, %v821_v59  ;;  %v828_v15 = vmul.f32 %v2297_v61, %v827_v4  ;;  %1730 = vrsqrt.f32 %v2301_v0 }
 0x217   : > { %v870_v11 = vmul.f32 %v825_v13, %v2244_v5  ;;  %1149 = vmatpush.msrb.mxu3 %v1057_v12 }
 0x218   : > { %v829_v28 = vmul.f32 0.5, %v828_v15  ;;  %v743_v29 = vpop.xlane.xlu0 %742  ;;  %v753_v30 = vpop.xlane.xlu2 %752 }
 0x219   : > { %v759_v33 = vmul.f32 %v743_v29, %v2241_v3  ;;  %v741_v9 = vpop.xlane.xlu1 %740  ;;  %v764_v35 = vmul.f32 %v753_v30, %v2241_v3  ;;  %v882_v5 = vmul.f32 %v2309_v6, %v870_v11 }
 0x21a   : > { %v830_v37 = vsub.f32 1.5, %v829_v28  ;;  %v758_v39 = vmul.f32 %v741_v9, %v2241_v3 }
 0x21b   : > { %v2324_v7 = vpop.eup %1728  ;;  %v2326_v46 = vadd.f32 1e-08, %v759_v33  ;;  %v2328_v50 = vadd.f32 1e-08, %v764_v35  ;;  %v895_v1 = vadd.f32 %v2317_v24, %v882_v5 }
 0x21c   : > { %v1731_v52 = vpop.eup %1730  ;;  %v831_v53 = vmul.f32 %v2297_v61, %v830_v37  ;;  %v837_v55 = vmul.f32 %v2324_v7, %v2299_v62  ;;  %v2335_v56 = vadd.f32 1e-08, %v758_v39  ;;  %vm843_vm13 = vweird.f32 %v2324_v7 }
 0x21d   : > { %v777_v57 = vmul.f32 %v1731_v52, %v2301_v0  ;;  %1732 = vrsqrt.f32 %v2326_v46  ;;  %v2351_v4 = vmax.f32 %v895_v1, 0.0  ;;  %vm783_vm15 = vweird.f32 %v1731_v52  ;;  %vm2369_vm2 = vmor %vm842_vm14, %vm843_vm13 }
 0x21e   : > { %v835_v40 = vsel %vm2339_vm12, %v2297_v61, %v831_v53  ;;  %v838_v2 = vmul.f32 %v2324_v7, %v837_v55  ;;  %1734 = vrsqrt.f32 %v2335_v56  ;;  %vm784_vm4 = vmor %vm782_vm0, %vm783_vm15  ;;  %vm802_vm5 = vweird.f32 %v2326_v46 }
 0x21f   : > { %v778_v59 = vmul.f32 %v1731_v52, %v777_v57  ;;  %1736 = vrsqrt.f32 %v2328_v50  ;;  %v871_v18 = vmul.f32 %v835_v40, %v2249_v16  ;;  %1121 = vmatmul.f32.vlgmr.msra.gmra.mxu3 %v2351_v4  ;;  %v2360_v16 = vshrl.u32 %v909_v63, 7 }
 0x220   : > { %v839_v13 = vmul.f32 0.5, %v838_v2  ;;  %v703_v15 = vpop.xlane.xlu2 %702  ;;  %vm792_vm11 = vweird.f32 %v2335_v56  ;;  %vm852_vm14 = vweird.f32 %v2328_v50 }
 0x221   : > { %v779_v11 = vmul.f32 0.5, %v778_v59  ;;  %v745_v61 = vpop.xlane.xlu1 %744  ;;  %v719_v27 = vmul.f32 %v2241_v3, %v703_v15  ;;  %v883_v30 = vmul.f32 %v2309_v6, %v871_v18  ;;  %v919_v19 = vadd.s32 4294967294, %v2360_v16 }
 0x222   : > { %v840_v28 = vsub.f32 1.5, %v839_v13  ;;  %v760_v29 = vmul.f32 %v745_v61, %v2241_v3 }
 0x223   : > { %v1733_v31 = vpop.eup %1732  ;;  %v780_v32 = vsub.f32 1.5, %v779_v11  ;;  %v2375_v42 = vsub.f32 %v2282_v47, %v719_v27  ;;  %v896_v45 = vadd.f32 %v2317_v24, %v883_v30  ;;  %vm928_vm12 = vcmp.ge.s32.totalorder %v919_v19, 0 }
 0x224   : > { %v1735_v33 = vpop.eup %1734  ;;  %v841_v9 = vmul.f32 %v2324_v7, %v840_v28  ;;  %v797_v35 = vmul.f32 %v1733_v31, %v2326_v46  ;;  %v2365_v5 = vadd.f32 1e-08, %v760_v29  ;;  %vm803_vm7 = vweird.f32 %v1733_v31 }
 0x225   : > { %v1737_v37 = vpop.eup %1736  ;;  %v781_v62 = vmul.f32 %v1731_v52, %v780_v32  ;;  %v787_v41 = vmul.f32 %v1735_v33, %v2335_v56  ;;  %v2385_v40 = vmax.f32 %v896_v45, 0.0  ;;  %vm793_vm8 = vweird.f32 %v1735_v33  ;;  %vm804_vm10 = vmor %vm802_vm5, %vm803_vm7 }
 0x226   : > { %v845_v0 = vsel %vm2369_vm2, %v2324_v7, %v841_v9  ;;  %v798_v1 = vmul.f32 %v1733_v31, %v797_v35  ;;  %v847_v51 = vmul.f32 %v1737_v37, %v2328_v50  ;;  %1738 = vrsqrt.f32 %v2365_v5  ;;  %vm794_vm13 = vmor %vm792_vm11, %vm793_vm8 }
 0x227   : > { %v785_v53 = vsel %vm784_vm4, %v1731_v52, %v781_v62  ;;  %v788_v55 = vmul.f32 %v1735_v33, %v787_v41  ;;  %v737_v7 = vmul.f32 %v2375_v42, %v2375_v42  ;;  %v872_v59 = vmul.f32 %v845_v0, %v2258_v21  ;;  %1124 = vmatmul.f32.gmra.mxu3 %v2385_v40 }
 0x228   : > { %v866_v57 = vmul.f32 %v785_v53, %v2255_v26  ;;  %v799_v47 = vmul.f32 0.5, %v798_v1  ;;  %v848_v58 = vmul.f32 %v1737_v37, %v847_v51  ;;  %vm853_vm9 = vweird.f32 %v1737_v37 }
 0x229   : > { %v789_v2 = vmul.f32 0.5, %v788_v55  ;;  %v754_v13 = vsel %vm700_vm6, %v737_v7, 0.0  ;;  %v884_v15 = vmul.f32 %v2309_v6, %v872_v59  ;;  %vm854_vm15 = vmor %vm852_vm14, %vm853_vm9  ;;  %vm812_vm2 = vweird.f32 %v2365_v5 }
 0x22a   : > { %v800_v52 = vsub.f32 1.5, %v799_v47  ;;  %v849_v63 = vmul.f32 0.5, %v848_v58  ;;  %v878_v12 = vmul.f32 %v2309_v6, %v866_v57  ;;  %755 = vadd.xlane.f32.xlu2 %v754_v13 }
 0x22b   : > { %v790_v26 = vsub.f32 1.5, %v789_v2  ;;  %v897_v28 = vadd.f32 %v2317_v24, %v884_v15 }
 0x22c   : > { %v801_v18 = vmul.f32 %v1733_v31, %v800_v52  ;;  %v850_v11 = vsub.f32 1.5, %v849_v63  ;;  %v891_v61 = vadd.f32 %v2317_v24, %v878_v12  ;;  %v1739_v21 = vpop.eup %1738 }
 0x22d   : > { %v791_v27 = vmul.f32 %v1735_v33, %v790_v26  ;;  %v807_v32 = vmul.f32 %v1739_v21, %v2365_v5  ;;  %v2404_v46 = vmax.f32 %v897_v28, 0.0  ;;  %vm813_vm0 = vweird.f32 %v1739_v21 }
 0x22e   : > { %v805_v29 = vsel %vm804_vm10, %v1733_v31, %v801_v18  ;;  %v851_v30 = vmul.f32 %v1737_v37, %v850_v11  ;;  %v900_v35 = vmax.f32 %v891_v61, 0.0  ;;  %vm814_vm4 = vmor %vm812_vm2, %vm813_vm0 }
 0x22f   : > { %v795_v9 = vsel %vm794_vm13, %v1735_v33, %v791_v27  ;;  %v868_v39 = vmul.f32 %v805_v29, %v2266_v34  ;;  %v808_v62 = vmul.f32 %v1739_v21, %v807_v32  ;;  %1127 = vmatmul.f32.gmra.mxu3 %v2404_v46  ;;  %v1023_v27 = vrot.slane %v2351_v4, 4 }
 0x230   : > { %v855_v56 = vsel %vm854_vm15, %v1737_v37, %v851_v30  ;;  %v867_v41 = vmul.f32 %v795_v9, %v2270_v36  ;;  %1588 = vmatmul.msk.f32.vlgmr.msrb.gmra.mxu2 %vm928_vm12, %v900_v35  ;;  %v973_v37 = vsel %vm928_vm12, %v900_v35, 0.0  ;;  %v1025_v30 = vrot.slane %v2385_v40, 4 }
 0x231   : > { %v873_v31 = vmul.f32 %v855_v56, %v2272_v38  ;;  %v809_v45 = vmul.f32 0.5, %v808_v62  ;;  %v880_v33 = vmul.f32 %v2309_v6, %v868_v39  ;;  %v1016_v47 = vrot.slane %v973_v37, 4 }
 0x232   : > { %v879_v50 = vmul.f32 %v2309_v6, %v867_v41  ;;  %v991_v12 = vrot.slane %v973_v37, 2  ;;  %v998_v32 = vrot.slane %v2351_v4, 2  ;;  %v1026_v35 = vsel %vm700_vm6, %v1023_v27, %v1025_v30 }
 0x233   : > { %v885_v0 = vmul.f32 %v2309_v6, %v873_v31  ;;  %v810_v1 = vsub.f32 1.5, %v809_v45  ;;  %v893_v53 = vadd.f32 %v2317_v24, %v880_v33  ;;  %v1000_v39 = vrot.slane %v2385_v40, 2 }
 0x234   : > { %v892_v34 = vadd.f32 %v2317_v24, %v879_v50  ;;  %v1027_v56 = vrot.slane %v2404_v46, 4  ;;  %v1002_v31 = vrot.slane %v2404_v46, 2 }
 0x235   : > { %v898_v36 = vadd.f32 %v2317_v24, %v885_v0  ;;  %v811_v51 = vmul.f32 %v1739_v21, %v810_v1  ;;  %v902_v7 = vmax.f32 %v893_v53, 0.0  ;;  %v1001_v62 = vsel %vm473_vm3, %v998_v32, %v1000_v39 }
 0x236   : > { %v901_v38 = vmax.f32 %v892_v34, 0.0  ;;  %v1028_v41 = vsel %vm700_vm6, %v1025_v30, %v1027_v56  ;;  %v1003_v45 = vsel %vm473_vm3, %v1000_v39, %v1002_v31 }
 0x237   : > { %v2419_v55 = vmax.f32 %v898_v36, 0.0  ;;  %v815_v57 = vsel %vm814_vm4, %v1739_v21, %v811_v51  ;;  %v1019_v52 = vrot.slane %v902_v7, 4  ;;  %v994_v15 = vrot.slane %v902_v7, 2 }
 0x238   : > { %v1017_v58 = vrot.slane %v901_v38, 4  ;;  %1112 = vmatmul.f32.gmra.mxu2 %v901_v38  ;;  %v869_v2 = vmul.f32 %v815_v57, %v2284_v49  ;;  %v992_v59 = vrot.slane %v901_v38, 2 }
 0x239   : > { %1130 = vmatmul.f32.gmra.mxu3 %v2419_v55  ;;  %v1029_v4 = vrot.slane %v2419_v55, 4  ;;  %v1004_v40 = vrot.slane %v2419_v55, 2  ;;  %v918_v55 = vadd.s32 64, %v2360_v16 }
 0x23a   : > { %v1018_v19 = vsel %vm700_vm6, %v1016_v47, %v1017_v58  ;;  %v881_v5 = vmul.f32 %v2309_v6, %v869_v2  ;;  %v993_v26 = vsel %vm473_vm3, %v991_v12, %v992_v59  ;;  %v1020_v13 = vsel %vm700_vm6, %v1017_v58, %v1019_v52  ;;  %v1719_v12 = vld [vmem:[%s2623_s6] ss:$0 sm:$0xff] }
 0x23b   : > { %1191 = vmatmul.f32.vlgmr.msrb.gmra.mxu0 %v1018_v19  ;;  %v995_v11 = vsel %vm473_vm3, %v992_v59, %v994_v15  ;;  %v1030_v50 = vsel %vm700_vm6, %v1027_v56, %v1029_v4  ;;  %v1005_v33 = vsel %vm473_vm3, %v1002_v31, %v1004_v40 }
 0x23c   : > { %v894_v63 = vadd.f32 %v2317_v24, %v881_v5 }
 0x23e   : > { %v903_v49 = vmax.f32 %v894_v63, 0.0 }
 0x240   : > { %1115 = vmatmul.f32.gmra.mxu2 %v902_v7  ;;  %v1021_v18 = vrot.slane %v903_v49, 4  ;;  %v996_v21 = vrot.slane %v903_v49, 2  ;;  %v927_v7 = vadd.s32 4294967294, %v918_v55 }
 0x241   : > { %1150 = vmatmul.f32.vlgmr.msrb.gmra.mxu3 %v993_v26 }
 0x242   : > { %v1022_v61 = vsel %vm700_vm6, %v1019_v52, %v1021_v18  ;;  %v997_v28 = vsel %vm473_vm3, %v994_v15, %v996_v21  ;;  %v1024_v29 = vsel %vm700_vm6, %v1021_v18, %v1023_v27  ;;  %v999_v9 = vsel %vm473_vm3, %v996_v21, %v998_v32 }
 0x243   : > { %1194 = vmatmul.f32.gmra.mxu0 %v1020_v13  ;;  %vm945_vm9 = vcmp.lt.s32.totalorder %v927_v7, 64 }
 0x248   : > { %1118 = vmatmul.f32.gmra.mxu2 %v903_v49 }
 0x249   : > { %1153 = vmatmul.f32.gmra.mxu3 %v995_v11 }
 0x24b   : > { %1197 = vmatmul.f32.gmra.mxu0 %v1022_v61 }
 0x251   : > { %1156 = vmatmul.f32.gmra.mxu3 %v997_v28 }
 0x253   : > { %1200 = vmatmul.f32.gmra.mxu0 %v1024_v29 }
 0x259   : > { %1159 = vmatmul.f32.gmra.mxu3 %v999_v9 }
 0x25b   : > { %1203 = vmatmul.f32.gmra.mxu0 %v1026_v35 }
 0x261   : > { %1162 = vmatmul.f32.gmra.mxu3 %v1001_v62 }
 0x263   : > { %1206 = vmatmul.f32.gmra.mxu0 %v1028_v41 }
 0x269   : > { %1165 = vmatmul.f32.gmra.mxu3 %v1003_v45 }
 0x26b   : > { %1209 = vmatmul.f32.gmra.mxu0 %v1030_v50 }
 0x271   : > { %1168 = vmatmul.f32.gmra.mxu3 %v1005_v33 }
 0x29d   : > { %v756_v0 = vpop.xlane.xlu2 %755 }
 0x29e   : > { %v765_v1 = vmul.f32 %v756_v0, %v2241_v3 }
 0x2a0   : > { %v775_v34 = vadd.f32 1e-08, %v765_v1 }
 0x2a2   : > { %1740 = vrsqrt.f32 %v775_v34  ;;  %v1122_v37 = vpop.f32.mrf.mxu3  ;;  %vm862_vm7 = vweird.f32 %v775_v34 }
 0x2a8   : > { %v1741_v46 = vpop.eup %1740 }
 0x2a9   : > { %v857_v36 = vmul.f32 %v1741_v46, %v775_v34  ;;  %vm863_vm5 = vweird.f32 %v1741_v46  ;;  %v1123_v34 = vadd.f32 %v1719_v12, %v1122_v37 }
 0x2aa   : > { %v1125_v38 = vpop.f32.mrf.mxu3  ;;  %vm864_vm8 = vmor %vm862_vm7, %vm863_vm5 }
 0x2ab   : > { %v858_v51 = vmul.f32 %v1741_v46, %v857_v36 }
 0x2ad   : > { %v859_v53 = vmul.f32 0.5, %v858_v51 }
 0x2af   : > { %v860_v57 = vsub.f32 1.5, %v859_v53  ;;  %v1126_v53 = vadd.f32 %v1719_v12, %v1125_v38 }
 0x2b1   : > { %v861_v47 = vmul.f32 %v1741_v46, %v860_v57 }
 0x2b2   : > { %v1128_v2 = vpop.f32.mrf.mxu3 }
 0x2b3   : > { %v865_v58 = vsel %vm864_vm8, %v1741_v46, %v861_v47  ;;  %v1110_v59 = vpop.f32.mrf.mxu2 }
 0x2b4   : > { %v874_v19 = vmul.f32 %v865_v58, %v2375_v42 }
 0x2b6   : > { %v886_v5 = vmul.f32 %v2309_v6, %v874_v19  ;;  %v1111_v6 = vadd.f32 %v1719_v12, %v1110_v59  ;;  %v1129_v19 = vadd.f32 %v1719_v12, %v1128_v2 }
 0x2b8   : > { %v899_v52 = vadd.f32 %v2317_v24, %v886_v5  ;;  %v1192_v63 = vpop.f32.mrf.mxu0 }
 0x2ba   : > { %v908_v26 = vmax.f32 %v899_v52, 0.0 }
 0x2bb   : > { %v1113_v24 = vpop.f32.mrf.mxu2 }
 0x2bc   : > { %v1131_v13 = vpop.f32.mrf.mxu3  ;;  %v981_v49 = vsel %vm945_vm9, %v908_v26, 0.0  ;;  %v1114_v29 = vadd.f32 %v1719_v12, %v1113_v24 }
 0x2bd   : > { %v1132_v16 = vadd.f32 %v1719_v12, %v1131_v13  ;;  %v1006_v15 = vrot.slane %v981_v49, 2  ;;  %v1031_v18 = vrot.slane %v981_v49, 4 }
 0x2bf   : > { %v1007_v42 = vsel %vm473_vm3, %v1004_v40, %v1006_v15  ;;  %v1032_v11 = vsel %vm700_vm6, %v1029_v4, %v1031_v18 }
 0x2c0   : > { %1171 = vmatmul.f32.gmra.mxu3 %v1007_v42  ;;  %1212 = vmatmul.f32.gmra.mxu0 %v1032_v11  ;;  %v1195_v61 = vpop.f32.mrf.mxu0 }
 0x2c3   : > { %v1116_v9 = vpop.f32.mrf.mxu2 }
 0x2c4   : > { %v1151_v21 = vpop.f32.mrf.mxu3  ;;  %v1117_v56 = vadd.f32 %v1719_v12, %v1116_v9 }
 0x2c5   : > { %v1152_v27 = vadd.f32 %v1151_v21, %v1111_v6 }
 0x2c7   : > { %v1193_v28 = vadd.f32 %v1192_v63, %v1152_v27 }
 0x2c8   : > { %v1198_v35 = vpop.f32.mrf.mxu0 }
 0x2c9   : > { %1216 = vadd.xlane.f32.xlu0 %v1193_v28 }
 0x2cb   : > { %v1119_v4 = vpop.f32.mrf.mxu2 }
 0x2cc   : > { %v1154_v30 = vpop.f32.mrf.mxu3  ;;  %v1120_v50 = vadd.f32 %v1719_v12, %v1119_v4 }
 0x2cd   : > { %v1155_v32 = vadd.f32 %v1154_v30, %v1114_v29 }
 0x2cf   : > { %v1196_v39 = vadd.f32 %v1195_v61, %v1155_v32 }
 0x2d0   : > { %v1201_v45 = vpop.f32.mrf.mxu0 }
 0x2d1   : > { %1218 = vadd.xlane.f32.xlu1 %v1196_v39 }
 0x2d4   : > { %v1157_v62 = vpop.f32.mrf.mxu3 }
 0x2d5   : > { %v1158_v41 = vadd.f32 %v1157_v62, %v1117_v56 }
 0x2d7   : > { %v1199_v31 = vadd.f32 %v1198_v35, %v1158_v41 }
 0x2d8   : > { %v1204_v1 = vpop.f32.mrf.mxu0 }
 0x2d9   : > { %1220 = vadd.xlane.f32.xlu2 %v1199_v31 }
 0x2dc   : > { %v1160_v40 = vpop.f32.mrf.mxu3 }
 0x2dd   : > { %v1161_v33 = vadd.f32 %v1160_v40, %v1120_v50  ;;  %v1412_v40 = vrot.slane %v2164_v60, 3 }
 0x2df   : > { %v1202_v0 = vadd.f32 %v1201_v45, %v1161_v33 }
 0x2e0   : > { %v1207_v57 = vpop.f32.mrf.mxu0 }
 0x2e1   : > { %1222 = vadd.xlane.f32.xlu0 %v1202_v0 }
 0x2e4   : > { %v1163_v46 = vpop.f32.mrf.mxu3 }
 0x2e5   : > { %v1164_v36 = vadd.f32 %v1163_v46, %v1123_v34  ;;  %v1414_v46 = vrot.slane %v2173_v8, 3 }
 0x2e7   : > { %v1205_v51 = vadd.f32 %v1204_v1, %v1164_v36  ;;  %v2497_v1 = vsel %vm1408_vm1, %v1410_v48, %v1412_v40 }
 0x2e8   : > { %v1210_v59 = vpop.f32.mrf.mxu0 }
 0x2e9   : > { %1224 = vadd.xlane.f32.xlu1 %v1205_v51 }
 0x2ec   : > { %v1166_v47 = vpop.f32.mrf.mxu3 }
 0x2ed   : > { %v1167_v55 = vadd.f32 %v1166_v47, %v1126_v53  ;;  %v2505_v47 = vsel %vm1408_vm1, %v1412_v40, %v1414_v46 }
 0x2ef   : > { %v1208_v58 = vadd.f32 %v1207_v57, %v1167_v55 }
 0x2f1   : > { %1226 = vadd.xlane.f32.xlu2 %v1208_v58 }
 0x2f4   : > { %v1169_v7 = vpop.f32.mrf.mxu3 }
 0x2f5   : > { %v1170_v5 = vadd.f32 %v1169_v7, %v1129_v19 }
 0x2f7   : > { %v1211_v52 = vadd.f32 %v1210_v59, %v1170_v5  ;;  %v2513_v59 = vsel %vm1408_vm1, %v1414_v46, %v1416_v14 }
 0x2f9   : > { %1228 = vadd.xlane.f32.xlu0 %v1211_v52 }
 0x33c   : > { %v1217_v63 = vpop.xlane.xlu0 %1216 }
 0x33d   : > { %v1232_v26 = vmul.f32 %v1217_v63, %v2241_v3  ;;  %v1213_v2 = vpop.f32.mrf.mxu0 }
 0x33f   : > { %v2458_v37 = vsub.f32 %v1193_v28, %v1232_v26 }
 0x341   : > { %v1248_v13 = vmul.f32 %v2458_v37, %v2458_v37 }
 0x343   : > { %1256 = vadd.xlane.f32.xlu2 %v1248_v13  ;;  %v1172_v38 = vpop.f32.mrf.mxu3 }
 0x344   : > { %v1219_v49 = vpop.xlane.xlu1 %1218  ;;  %v1173_v15 = vadd.f32 %v1172_v38, %v1132_v16 }
 0x345   : > { %v1233_v18 = vmul.f32 %v1219_v49, %v2241_v3  ;;  %v2518_v49 = vld [vmem:[%s2624_s7] ss:$0 sm:$0xff] }
 0x346   : > { %v1214_v42 = vadd.f32 %v1213_v2, %v1173_v15 }
 0x347   : > { %v2463_v12 = vsub.f32 %v1196_v39, %v1233_v18 }
 0x348   : > { %1230 = vadd.xlane.f32.xlu1 %v1214_v42 }
 0x349   : > { %v1249_v11 = vmul.f32 %v2463_v12, %v2463_v12 }
 0x34b   : > { %1258 = vadd.xlane.f32.xlu0 %v1249_v11 }
 0x34c   : > { %v1221_v6 = vpop.xlane.xlu2 %1220 }
 0x34d   : > { %v1234_v24 = vmul.f32 %v1221_v6, %v2241_v3 }
 0x34f   : > { %v2468_v61 = vsub.f32 %v1199_v31, %v1234_v24 }
 0x351   : > { %v1250_v21 = vmul.f32 %v2468_v61, %v2468_v61 }
 0x353   : > { %1260 = vadd.xlane.f32.xlu1 %v1250_v21 }
 0x354   : > { %v1223_v16 = vpop.xlane.xlu0 %1222 }
 0x355   : > { %v1235_v27 = vmul.f32 %v1223_v16, %v2241_v3 }
 0x357   : > { %v2473_v28 = vsub.f32 %v1202_v0, %v1235_v27 }
 0x359   : > { %v1251_v29 = vmul.f32 %v2473_v28, %v2473_v28 }
 0x35b   : > { %1262 = vadd.xlane.f32.xlu2 %v1251_v29 }
 0x35c   : > { %v1225_v30 = vpop.xlane.xlu1 %1224 }
 0x35d   : > { %v1236_v32 = vmul.f32 %v1225_v30, %v2241_v3 }
 0x35f   : > { %v2478_v9 = vsub.f32 %v1205_v51, %v1236_v32 }
 0x361   : > { %v1252_v35 = vmul.f32 %v2478_v9, %v2478_v9 }
 0x363   : > { %1264 = vadd.xlane.f32.xlu0 %v1252_v35 }
 0x364   : > { %v1227_v39 = vpop.xlane.xlu2 %1226 }
 0x365   : > { %v1237_v56 = vmul.f32 %v1227_v39, %v2241_v3 }
 0x367   : > { %v2483_v62 = vsub.f32 %v1208_v58, %v1237_v56 }
 0x369   : > { %v1253_v41 = vmul.f32 %v2483_v62, %v2483_v62 }
 0x36b   : > { %1266 = vadd.xlane.f32.xlu1 %v1253_v41 }
 0x36c   : > { %v1229_v31 = vpop.xlane.xlu0 %1228 }
 0x36d   : > { %v1238_v4 = vmul.f32 %v1229_v31, %v2241_v3 }
 0x36f   : > { %v2488_v45 = vsub.f32 %v1211_v52, %v1238_v4 }
 0x371   : > { %v1254_v50 = vmul.f32 %v2488_v45, %v2488_v45 }
 0x373   : > { %1268 = vadd.xlane.f32.xlu2 %v1254_v50 }
 0x3b6   : > { %v1257_v33 = vpop.xlane.xlu2 %1256 }
 0x3b7   : > { %v1272_v0 = vmul.f32 %v1257_v33, %v2241_v3 }
 0x3b9   : > { %v1281_v34 = vadd.f32 1e-08, %v1272_v0 }
 0x3bb   : > { %1742 = vrsqrt.f32 %v1281_v34  ;;  %v1231_v36 = vpop.xlane.xlu1 %1230  ;;  %vm1295_vm6 = vweird.f32 %v1281_v34 }
 0x3bc   : > { %v1239_v51 = vmul.f32 %v1231_v36, %v2241_v3 }
 0x3be   : > { %v1259_v53 = vpop.xlane.xlu0 %1258  ;;  %v2501_v57 = vsub.f32 %v1214_v42, %v1239_v51 }
 0x3bf   : > { %v1273_v60 = vmul.f32 %v1259_v53, %v2241_v3 }
 0x3c0   : > { %v1255_v48 = vmul.f32 %v2501_v57, %v2501_v57 }
 0x3c1   : > { %v1743_v55 = vpop.eup %1742  ;;  %v1282_v43 = vadd.f32 1e-08, %v1273_v60 }
 0x3c2   : > { %v1290_v58 = vmul.f32 %v1743_v55, %v1281_v34  ;;  %1270 = vadd.xlane.f32.xlu0 %v1255_v48  ;;  %vm1296_vm3 = vweird.f32 %v1743_v55 }
 0x3c3   : > { %1744 = vrsqrt.f32 %v1282_v43  ;;  %vm1297_vm10 = vmor %vm1295_vm6, %vm1296_vm3  ;;  %vm1305_vm12 = vweird.f32 %v1282_v43 }
 0x3c4   : > { %v1291_v8 = vmul.f32 %v1743_v55, %v1290_v58 }
 0x3c6   : > { %v1292_v19 = vmul.f32 0.5, %v1291_v8  ;;  %v1261_v7 = vpop.xlane.xlu1 %1260 }
 0x3c7   : > { %v1274_v5 = vmul.f32 %v1261_v7, %v2241_v3 }
 0x3c8   : > { %v1293_v52 = vsub.f32 1.5, %v1292_v19 }
 0x3c9   : > { %v1745_v63 = vpop.eup %1744  ;;  %v1283_v26 = vadd.f32 1e-08, %v1274_v5 }
 0x3ca   : > { %v1294_v13 = vmul.f32 %v1743_v55, %v1293_v52  ;;  %v1300_v38 = vmul.f32 %v1745_v63, %v1282_v43  ;;  %vm1306_vm11 = vweird.f32 %v1745_v63 }
 0x3cb   : > { %1746 = vrsqrt.f32 %v1283_v26  ;;  %vm1307_vm13 = vmor %vm1305_vm12, %vm1306_vm11  ;;  %vm1315_vm15 = vweird.f32 %v1283_v26 }
 0x3cc   : > { %v1298_v15 = vsel %vm1297_vm10, %v1743_v55, %v1294_v13  ;;  %v1301_v18 = vmul.f32 %v1745_v63, %v1300_v38 }
 0x3cd   : > { %v1369_v14 = vmul.f32 %v1298_v15, %v2458_v37 }
 0x3ce   : > { %v1302_v2 = vmul.f32 0.5, %v1301_v18  ;;  %v1263_v42 = vpop.xlane.xlu2 %1262 }
 0x3cf   : > { %v1380_v11 = vmul.f32 %v2518_v49, %v1369_v14  ;;  %v1275_v6 = vmul.f32 %v1263_v42, %v2241_v3 }
 0x3d0   : > { %v1303_v24 = vsub.f32 1.5, %v1302_v2 }
 0x3d1   : > { %v1747_v21 = vpop.eup %1746  ;;  %v1392_v16 = vadd.f32 %v2523_v17, %v1380_v11  ;;  %v1284_v27 = vadd.f32 1e-08, %v1275_v6 }
 0x3d2   : > { %v1304_v29 = vmul.f32 %v1745_v63, %v1303_v24  ;;  %v1310_v30 = vmul.f32 %v1747_v21, %v1283_v26  ;;  %vm1316_vm14 = vweird.f32 %v1747_v21 }
 0x3d3   : > { %v1400_v32 = vmax.f32 %v1392_v16, 0.0  ;;  %1748 = vrsqrt.f32 %v1284_v27  ;;  %vm1317_vm0 = vmor %vm1315_vm15, %vm1316_vm14  ;;  %vm1325_vm4 = vweird.f32 %v1284_v27 }
 0x3d4   : > { %v1308_v37 = vsel %vm1307_vm13, %v1745_v63, %v1304_v29  ;;  %v1311_v35 = vmul.f32 %v1747_v21, %v1310_v30 }
 0x3d5   : > { %v1434_v39 = vadd.f32 %v2159_v54, %v1400_v32  ;;  %v1370_v56 = vmul.f32 %v1308_v37, %v2463_v12 }
 0x3d6   : > { %v1312_v41 = vmul.f32 0.5, %v1311_v35  ;;  %v1265_v31 = vpop.xlane.xlu0 %1264 }
 0x3d7   : > { %1442 = vst [vmem:[%s2533_s21] sm:$0xff] %v1434_v39  ;;  %v1381_v4 = vmul.f32 %v2518_v49, %v1370_v56  ;;  %v1276_v50 = vmul.f32 %v1265_v31, %v2241_v3 }
 0x3d8   : > { %v1313_v40 = vsub.f32 1.5, %v1312_v41 }
 0x3d9   : > { %v1749_v33 = vpop.eup %1748  ;;  %v1393_v0 = vadd.f32 %v2523_v17, %v1381_v4  ;;  %v1285_v54 = vadd.f32 1e-08, %v1276_v50 }
 0x3da   : > { %v1314_v34 = vmul.f32 %v1747_v21, %v1313_v40  ;;  %v1320_v12 = vmul.f32 %v1749_v33, %v1284_v27  ;;  %vm1326_vm2 = vweird.f32 %v1749_v33 }
 0x3db   : > { %v1401_v46 = vmax.f32 %v1393_v0, 0.0  ;;  %1750 = vrsqrt.f32 %v1285_v54  ;;  %vm1327_vm5 = vmor %vm1325_vm4, %vm1326_vm2  ;;  %vm1335_vm8 = vweird.f32 %v1285_v54 }
 0x3dc   : > { %v1318_v36 = vsel %vm1317_vm0, %v1747_v21, %v1314_v34  ;;  %v1321_v51 = vmul.f32 %v1749_v33, %v1320_v12 }
 0x3dd   : > { %v1435_v53 = vadd.f32 %v2497_v1, %v1401_v46  ;;  %v1371_v60 = vmul.f32 %v1318_v36, %v2468_v61 }
 0x3de   : > { %v1322_v55 = vmul.f32 0.5, %v1321_v51  ;;  %v1267_v43 = vpop.xlane.xlu1 %1266 }
 0x3df   : > { %1443 = vst [vmem:[%s2533_s21 + $0x8] sm:$0xff] %v1435_v53  ;;  %v1382_v48 = vmul.f32 %v2518_v49, %v1371_v60  ;;  %v1277_v58 = vmul.f32 %v1267_v43, %v2241_v3 }
 0x3e0   : > { %v1323_v8 = vsub.f32 1.5, %v1322_v55 }
 0x3e1   : > { %v1751_v19 = vpop.eup %1750  ;;  %v1394_v7 = vadd.f32 %v2523_v17, %v1382_v48  ;;  %v1286_v5 = vadd.f32 1e-08, %v1277_v58 }
 0x3e2   : > { %v1324_v52 = vmul.f32 %v1749_v33, %v1323_v8  ;;  %v1330_v63 = vmul.f32 %v1751_v19, %v1285_v54  ;;  %vm1336_vm7 = vweird.f32 %v1751_v19 }
 0x3e3   : > { %v1402_v1 = vmax.f32 %v1394_v7, 0.0  ;;  %1752 = vrsqrt.f32 %v1286_v5  ;;  %vm1337_vm9 = vmor %vm1335_vm8, %vm1336_vm7  ;;  %vm1345_vm6 = vweird.f32 %v1286_v5 }
 0x3e4   : > { %v1328_v61 = vsel %vm1327_vm5, %v1749_v33, %v1324_v52  ;;  %v1331_v26 = vmul.f32 %v1751_v19, %v1330_v63 }
 0x3e5   : > { %v1436_v13 = vadd.f32 %v2505_v47, %v1402_v1  ;;  %v1372_v38 = vmul.f32 %v1328_v61, %v2473_v28 }
 0x3e6   : > { %v1332_v15 = vmul.f32 0.5, %v1331_v26  ;;  %v1269_v18 = vpop.xlane.xlu2 %1268 }
 0x3e7   : > { %1444 = vst [vmem:[%s2533_s21 + $0x10] sm:$0xff] %v1436_v13  ;;  %v1383_v14 = vmul.f32 %v2518_v49, %v1372_v38  ;;  %v1278_v2 = vmul.f32 %v1269_v18, %v2241_v3 }
 0x3e8   : > { %v1333_v42 = vsub.f32 1.5, %v1332_v15 }
 0x3e9   : > { %v1753_v11 = vpop.eup %1752  ;;  %v1395_v6 = vadd.f32 %v2523_v17, %v1383_v14  ;;  %v1287_v24 = vadd.f32 1e-08, %v1278_v2 }
 0x3ea   : > { %v1334_v21 = vmul.f32 %v1751_v19, %v1333_v42  ;;  %v1340_v16 = vmul.f32 %v1753_v11, %v1286_v5  ;;  %vm1346_vm3 = vweird.f32 %v1753_v11 }
 0x3eb   : > { %v1403_v47 = vmax.f32 %v1395_v6, 0.0  ;;  %1754 = vrsqrt.f32 %v1287_v24  ;;  %vm1347_vm10 = vmor %vm1345_vm6, %vm1346_vm3  ;;  %vm1355_vm12 = vweird.f32 %v1287_v24 }
 0x3ec   : > { %v1338_v28 = vsel %vm1337_vm9, %v1751_v19, %v1334_v21  ;;  %v1341_v27 = vmul.f32 %v1753_v11, %v1340_v16 }
 0x3ed   : > { %v1437_v29 = vadd.f32 %v2513_v59, %v1403_v47  ;;  %v1373_v30 = vmul.f32 %v1338_v28, %v2478_v9 }
 0x3ee   : > { %v1342_v32 = vmul.f32 0.5, %v1341_v27 }
 0x3ef   : > { %1445 = vst [vmem:[%s2533_s21 + $0x18] sm:$0xff] %v1437_v29  ;;  %v1384_v37 = vmul.f32 %v2518_v49, %v1373_v30 }
 0x3f0   : > { %v1343_v35 = vsub.f32 1.5, %v1342_v32 }
 0x3f1   : > { %v1755_v39 = vpop.eup %1754  ;;  %v1396_v56 = vadd.f32 %v2523_v17, %v1384_v37 }
 0x3f2   : > { %v1344_v41 = vmul.f32 %v1753_v11, %v1343_v35  ;;  %v1350_v31 = vmul.f32 %v1755_v39, %v1287_v24  ;;  %vm1356_vm11 = vweird.f32 %v1755_v39 }
 0x3f3   : > { %v1404_v4 = vmax.f32 %v1396_v56, 0.0  ;;  %vm1357_vm13 = vmor %vm1355_vm12, %vm1356_vm11 }
 0x3f4   : > { %v1348_v50 = vsel %vm1347_vm10, %v1753_v11, %v1344_v41  ;;  %v1351_v40 = vmul.f32 %v1755_v39, %v1350_v31 }
 0x3f5   : > { %v1438_v59 = vadd.f32 %v2195_v22, %v1404_v4  ;;  %v1374_v9 = vmul.f32 %v1348_v50, %v2483_v62  ;;  %v1422_v62 = vrot.slane %v2178_v10, 3 }
 0x3f6   : > { %v1352_v33 = vmul.f32 0.5, %v1351_v40 }
 0x3f7   : > { %1446 = vst [vmem:[%s2533_s21 + $0x20] sm:$0xff] %v1438_v59  ;;  %v1385_v0 = vmul.f32 %v2518_v49, %v1374_v9  ;;  %v1423_v55 = vsel %vm1408_vm1, %v1420_v23, %v1422_v62 }
 0x3f8   : > { %v1353_v54 = vsub.f32 1.5, %v1352_v33 }
 0x3f9   : > { %v1397_v34 = vadd.f32 %v2523_v17, %v1385_v0 }
 0x3fa   : > { %v1354_v12 = vmul.f32 %v1755_v39, %v1353_v54 }
 0x3fb   : > { %v1405_v46 = vmax.f32 %v1397_v34, 0.0 }
 0x3fc   : > { %v1358_v36 = vsel %vm1357_vm13, %v1755_v39, %v1354_v12 }
 0x3fd   : > { %v1439_v51 = vadd.f32 %v2140_v25, %v1405_v46  ;;  %v1375_v22 = vmul.f32 %v1358_v36, %v2488_v45 }
 0x3ff   : > { %1447 = vst [vmem:[%s2533_s21 + $0x28] sm:$0xff] %v1439_v51  ;;  %v1386_v53 = vmul.f32 %v2518_v49, %v1375_v22 }
 0x401   : > { %v1398_v60 = vadd.f32 %v2523_v17, %v1386_v53 }
 0x403   : > { %v1406_v43 = vmax.f32 %v1398_v60, 0.0 }
 0x405   : > { %v1440_v48 = vadd.f32 %v1423_v55, %v1406_v43 }
 0x407   : > { %1448 = vst [vmem:[%s2533_s21 + $0x30] sm:$0xff] %v1440_v48 }
 0x435   : > { %v1271_v58 = vpop.xlane.xlu0 %1270 }
 0x436   : > { %v1279_v25 = vmul.f32 %v1271_v58, %v2241_v3  ;;  %v1424_v3 = vrot.slane %v2217_v44, 3 }
 0x438   : > { %v1288_v8 = vadd.f32 1e-08, %v1279_v25  ;;  %v1425_v61 = vsel %vm1408_vm1, %v1422_v62, %v1424_v3 }
 0x43a   : > { %1756 = vrsqrt.f32 %v1288_v8  ;;  %vm1365_vm15 = vweird.f32 %v1288_v8 }
 0x440   : > { %v1757_v45 = vpop.eup %1756 }
 0x441   : > { %v1360_v10 = vmul.f32 %v1757_v45, %v1288_v8  ;;  %vm1366_vm14 = vweird.f32 %v1757_v45 }
 0x442   : > { %vm1367_vm0 = vmor %vm1365_vm15, %vm1366_vm14 }
 0x443   : > { %v1361_v19 = vmul.f32 %v1757_v45, %v1360_v10 }
 0x445   : > { %v1362_v7 = vmul.f32 0.5, %v1361_v19 }
 0x447   : > { %v1363_v5 = vsub.f32 1.5, %v1362_v7 }
 0x449   : > { %v1364_v52 = vmul.f32 %v1757_v45, %v1363_v5 }
 0x44b   : > { %v1368_v20 = vsel %vm1367_vm0, %v1757_v45, %v1364_v52 }
 0x44c   : > { %v1376_v23 = vmul.f32 %v1368_v20, %v2501_v57 }
 0x44e   : > { %v1387_v63 = vmul.f32 %v2518_v49, %v1376_v23 }
 0x450   : > { %v1399_v1 = vadd.f32 %v2523_v17, %v1387_v63 }
 0x452   : > { %v1407_v26 = vmax.f32 %v1399_v1, 0.0 }
 0x454   : > { %v1441_v13 = vadd.f32 %v1425_v61, %v1407_v26 }
 0x456   : > { %1449 = vst [vmem:[%s2533_s21 + $0x38] sm:$0xff] %v1441_v13 }
 0x457   : > { %1875 = shalt.err (!%p1872_p0)
}
 0x458   : > { %s1941_s26 = smov 128   ;;  %s1942_s15 = smov 8  }
 0x459   : > { %1638 = dma.vmem_to_hbm [thread:$0]  (%p2075_p2), %s1466_s17, 1024, %s1468_s18, %s1451_s12, %s1941_s26, %s1941_s26, %s1942_s15  }
 0x45a PF: > { %s2654_s21 = sld [smem:[#allocation12_spill]]  ;;  %p1652_p4 = pnand %p1576_p10, %p2040_p5 }
 0x45c   : > { %p1653_p6 = pneg %p1652_p4 }
 0x460   : > { %s1482_s29 = sand.u32 1, %s2654_s21  }
 0x461   : > { %s1483_s16 = scalar_lea.sflag [#allocation4], %s1482_s29 }
 0x462   : > { %1909 = dma.done.wait (%p1653_p6), %s1483_s16, 1024  }
 0x463   : > { %1911 = vsyncadd (%p1653_p6), %s1483_s16, 4294966272  ;;  %s26_s14 = sadd.s32 1, %s1934_s14   ;;  %s2656_s1 = sld [smem:[#allocation14_spill]] }
 0x464   : > { %p23_p8 = scmp.ge.s32.totalorder %s26_s14, 4   ;;  %s2657_s30 = smov %s1918_s10 }
 0x465   : > { %s2658_s10 = smov %s1922_s11  ;;  %s2659_s11 = smov %s2085_s20 }
 0x466   : > { %s2660_s12 = smov %s1930_s13  ;;  %25 = sbr.rel (!%p23_p8) target bundleno = 10 (0xa), region = 109 }
 0x469   : > { %s2661_s13 = smov %s2656_s1 }
 0x46b   :  { %1489 = vsyncpa [#allocation3], 1 }
 0x46c   :  { %1491 = vsyncpa [#allocation3 + $0x1], 1 }
 0x46d   :  { %1492 = vsyncpa [#allocation6], 1 }
 0x46e   :  { %1493 = vsyncpa [#allocation4], 1 }
 0x46f   :  { %1495 = vsyncpa [#allocation4 + $0x1], 1 }

</bundles_post_ra>
